<compile_context>
chip_gen: v5e
topology: v5e:2x2
jax: 0.10.0
libtpu: 0.0.40
codegen_flags: <defaults>
</compile_context>

<pallas_src>
import functools

import jax
import jax.numpy as jnp
from jax import lax
from jax.experimental import pallas as pl
from jax.experimental.pallas import tpu as pltpu


def _layernorm(x, w, b, eps=1e-5):
    # x: (T, C) f32, w/b: (1, C) f32
    mu = jnp.mean(x, axis=-1, keepdims=True)
    var = jnp.mean(jnp.square(x - mu), axis=-1, keepdims=True)
    return (x - mu) * lax.rsqrt(var + eps) * w + b


def _gelu_exact(x):
    # matches torch.nn.GELU() (erf formulation), computed in f32
    return 0.5 * x * (1.0 + lax.erf(x * (1.0 / jnp.sqrt(2.0))))


# --------------------------------------------------------------------------- #
# Kernel A: norm1 + packed QKV projection (single (TP,C)@(C,3C) MXU matmul).
# --------------------------------------------------------------------------- #
def qkv_kernel(x_ref, n1w_ref, n1b_ref, wqkv_ref, bqkv_ref,
               q_ref, k_ref, v_ref, *, num_heads):
    _, T, C = x_ref.shape
    hd = C // num_heads
    h = _layernorm(x_ref[0], n1w_ref[...], n1b_ref[...]).astype(jnp.bfloat16)
    qkv = (jnp.dot(h, wqkv_ref[...], preferred_element_type=jnp.float32)
           + bqkv_ref[...]).astype(jnp.bfloat16)                    # (T, 3C)
    # Split into heads once, here (the flash kernel then reads head-major q/k/v
    # and never pays a per-inner-step lane relayout).  Scale is already folded
    # into the q columns of wqkv/bqkv on the host.
    for hh in range(num_heads):
        q_ref[0, hh] = qkv[:, 0 * C + hh * hd: 0 * C + (hh + 1) * hd]
        k_ref[0, hh] = qkv[:, 1 * C + hh * hd: 1 * C + (hh + 1) * hd]
        v_ref[0, hh] = qkv[:, 2 * C + hh * hd: 2 * C + (hh + 1) * hd]


# --------------------------------------------------------------------------- #
# Kernel B: flash attention (all heads batched) + out-proj + MLP, fused.
# --------------------------------------------------------------------------- #
def attn_mlp_kernel(x_ref, q_ref, k_ref, v_ref,
                    projw_ref, projb_ref, n2w_ref, n2b_ref,
                    l1w_ref, l1b_ref, l2w_ref, l2b_ref,
                    o_ref,
                    m_scr, l_scr, acc_scr,
                    *, num_heads, softmax_bf16):
    ki = pl.program_id(2)
    nk = pl.num_programs(2)

    # ---- per-query-tile init of online-softmax state ------------------------
    @pl.when(ki == 0)
    def _init():
        m_scr[...] = jnp.full(m_scr.shape, -jnp.inf, dtype=jnp.float32)
        l_scr[...] = jnp.zeros(l_scr.shape, dtype=jnp.float32)
        acc_scr[...] = jnp.zeros(acc_scr.shape, dtype=jnp.float32)

    # ---- one KV tile: batched QK^T / PV over all heads ----------------------
    s = jnp.einsum("hqd,hkd->hqk", q_ref[0], k_ref[0],
                   preferred_element_type=jnp.float32)              # (nH, TQ, TK)
    m_prev = m_scr[...]                                             # (nH, TQ, 1)
    m_new = jnp.maximum(m_prev, jnp.max(s, axis=-1, keepdims=True))
    alpha = jnp.exp(m_prev - m_new)
    p_dtype = jnp.bfloat16 if softmax_bf16 else jnp.float32
    p = jnp.exp((s - m_new).astype(p_dtype))
    l_scr[...] = alpha * l_scr[...] + jnp.sum(p, axis=-1, keepdims=True,
                                              dtype=jnp.float32)
    pv = jnp.einsum("hqk,hkd->hqd", p.astype(jnp.bfloat16), v_ref[0],
                    preferred_element_type=jnp.float32)             # (nH, TQ, hd)
    acc_scr[...] = alpha * acc_scr[...] + pv
    m_scr[...] = m_new

    # ---- finalize: output proj + residual + norm2 + MLP + residual ----------
    @pl.when(ki == nk - 1)
    def _finalize():
        ctx = (acc_scr[...] * pl.reciprocal(l_scr[...], approx=True)
               ).astype(jnp.bfloat16)                               # (nH, TQ, hd)
        # Pack heads lane-dense once -> single full-width output projection.
        attn16 = jnp.concatenate([ctx[hh] for hh in range(num_heads)], axis=-1)
        attn = (jnp.dot(attn16, projw_ref[...],
                        preferred_element_type=jnp.float32) + projb_ref[...])
        x2 = x_ref[0] + attn                                        # residual 1 (f32)
        h2 = _layernorm(x2, n2w_ref[...], n2b_ref[...]).astype(jnp.bfloat16)
        m1 = (jnp.dot(h2, l1w_ref[...], preferred_element_type=jnp.float32)
              + l1b_ref[...])
        m1 = _gelu_exact(m1).astype(jnp.bfloat16)
        m2 = (jnp.dot(m1, l2w_ref[...], preferred_element_type=jnp.float32)
              + l2b_ref[...])
        # TODO(synk): emit bf16 output (and accept bf16 x) if the consumer allows it.
        o_ref[0] = (x2 + m2).astype(o_ref.dtype)


# --------------------------------------------------------------------------- #
# Host-side wrapper
# --------------------------------------------------------------------------- #
def _choose_tile(n, cap):
    """Largest tile <= cap that divides n (multiple of 8), else full n."""
    if n <= cap:
        return n
    for t in (cap, 1024, 512, 256, 128, 64, 32, 16, 8):
        if t <= cap and n % t == 0:
            return t
    # TODO(synk): pad-and-mask path for N with no nice divisor <= cap.
    return n


def _device_cfg():
    try:
        kind = jax.devices()[0].device_kind.lower()
    except Exception:  # pragma: no cover
        kind = ""
    if "v7" in kind:
        # 64 MiB VMEM per TensorCore: keep 256 tiles + modest limit.
        return dict(q_tile=256, kv_tile=256, vmem_limit=40 * 1024 * 1024,
                    softmax_bf16=True)
    if "v6" in kind or "trillium" in kind:
        # 128 MiB VMEM, bf16 EUP: bigger KV tiles + generous limit.
        return dict(q_tile=256, kv_tile=512, vmem_limit=96 * 1024 * 1024,
                    softmax_bf16=True)
    if "v5 lite" in kind or "v5e" in kind:
        # 128 MiB VMEM but no bf16 VPU/EUP.
        return dict(q_tile=256, kv_tile=512, vmem_limit=96 * 1024 * 1024,
                    softmax_bf16=False)
    # Unknown part: conservative settings.
    return dict(q_tile=256, kv_tile=256, vmem_limit=48 * 1024 * 1024,
                softmax_bf16=False)


def _const_spec(a, single_buffer):
    nd = a.ndim
    idx = lambda *_, _nd=nd: (0,) * _nd
    if single_buffer:
        # Constant weights: one VMEM buffer instead of two (halves weight VMEM).
        return pl.BlockSpec(a.shape, idx, pipeline_mode=pl.Buffered(1))
    return pl.BlockSpec(a.shape, idx)


def _forward(x, params, num_heads, cfg, single_buffer_weights):
    B, H, W, C = x.shape
    N = H * W
    assert C % num_heads == 0, "dim must be divisible by num_heads"
    hd = C // num_heads
    scale = hd ** -0.5

    TP = _choose_tile(N, 512)
    TQ = _choose_tile(N, cfg["q_tile"])
    TK = _choose_tile(N, cfg["kv_tile"])
    assert N % TP == 0 and N % TQ == 0 and N % TK == 0

    xf = x.reshape(B, N, C).astype(jnp.float32)
    row = lambda v: v.reshape(1, -1).astype(jnp.float32)

    # Weight prep: PyTorch Linear (out,in) -> (in,out); matmul weights bf16,
    # biases / LayerNorm params f32; attention scale folded into q weights/bias.
    qkv_wt = params["qkv_w"].T.astype(jnp.float32)                  # (C, 3C)
    wqkv = jnp.concatenate([qkv_wt[:, :C] * scale, qkv_wt[:, C:]],
                           axis=1).astype(jnp.bfloat16)
    qkv_b = params["qkv_b"].astype(jnp.float32)
    bqkv = jnp.concatenate([qkv_b[:C] * scale, qkv_b[C:]]).reshape(1, 3 * C)

    projw = params["proj_w"].T.astype(jnp.bfloat16)                 # (C, C)
    l1w = params["lin1_w"].T.astype(jnp.bfloat16)                   # (C, mlp)
    l2w = params["lin2_w"].T.astype(jnp.bfloat16)                   # (mlp, C)

    # ---------------- kernel A: norm1 + packed QKV projection ---------------
    a_weights = (row(params["n1_w"]), row(params["n1_b"]), wqkv, bqkv)
    qkv_shape = jax.ShapeDtypeStruct((B, num_heads, N, hd), jnp.bfloat16)
    q, k, v = pl.pallas_call(
        functools.partial(qkv_kernel, num_heads=num_heads),
        out_shape=(qkv_shape, qkv_shape, qkv_shape),
        grid_spec=pltpu.PrefetchScalarGridSpec(
            num_scalar_prefetch=0,
            grid=(B, N // TP),
            in_specs=[pl.BlockSpec((1, TP, C), lambda b, t: (b, t, 0))]
                     + [_const_spec(a, single_buffer_weights) for a in a_weights],
            out_specs=tuple(
                pl.BlockSpec((1, num_heads, TP, hd), lambda b, t: (b, 0, t, 0))
                for _ in range(3)),
        ),
        compiler_params=pltpu.CompilerParams(
            dimension_semantics=("parallel", "parallel"),
            vmem_limit_bytes=cfg["vmem_limit"],
        ),
    )(xf, *a_weights)

    # ---------------- kernel B: flash attention + out-proj + MLP ------------
    b_weights = (
        projw, row(params["proj_b"]),
        row(params["n2_w"]), row(params["n2_b"]),
        l1w, row(params["lin1_b"]),
        l2w, row(params["lin2_b"]),
    )
    in_specs = [
        pl.BlockSpec((1, TQ, C), lambda b, qi, ki: (b, qi, 0)),      # residual x
        pl.BlockSpec((1, num_heads, TQ, hd), lambda b, qi, ki: (b, 0, qi, 0)),
        pl.BlockSpec((1, num_heads, TK, hd), lambda b, qi, ki: (b, 0, ki, 0)),
        pl.BlockSpec((1, num_heads, TK, hd), lambda b, qi, ki: (b, 0, ki, 0)),
    ] + [_const_spec(a, single_buffer_weights) for a in b_weights]

    out = pl.pallas_call(
        functools.partial(attn_mlp_kernel, num_heads=num_heads,
                          softmax_bf16=cfg["softmax_bf16"]),
        out_shape=jax.ShapeDtypeStruct((B, N, C), x.dtype),
        grid_spec=pltpu.PrefetchScalarGridSpec(
            num_scalar_prefetch=0,
            grid=(B, N // TQ, N // TK),
            in_specs=in_specs,
            out_specs=pl.BlockSpec((1, TQ, C), lambda b, qi, ki: (b, qi, 0)),
            scratch_shapes=[
                pltpu.VMEM((num_heads, TQ, 1), jnp.float32),    # running max m
                pltpu.VMEM((num_heads, TQ, 1), jnp.float32),    # running sum l
                pltpu.VMEM((num_heads, TQ, hd), jnp.float32),   # PV accumulator
            ],
        ),
        compiler_params=pltpu.CompilerParams(
            dimension_semantics=("parallel", "parallel", "arbitrary"),
            vmem_limit_bytes=cfg["vmem_limit"],
        ),
    )(xf, q, k, v, *b_weights)
    return out.reshape(B, H, W, C)


def sam_block_forward(x, params, num_heads):
    """x: (B, H, W, C) float32. Returns (B, H, W, C). Global attention path."""
    cfg = _device_cfg()
    try:
        return _forward(x, params, num_heads, cfg, single_buffer_weights=True)
    except Exception:
        # This jax build rejected pl.Buffered(1) single-buffering; retry with the
        # default double-buffered constant weights (correct, slightly more VMEM).
        return _forward(x, params, num_heads, cfg, single_buffer_weights=False)


# --------------------------------------------------------------------------- #
# Parameters + pure-JAX reference
# --------------------------------------------------------------------------- #
def init_params(key, dim, mlp_dim):
    ks = jax.random.split(key, 10)

    def lin(kw, kb, out_f, in_f):
        w = jax.random.normal(kw, (out_f, in_f), jnp.float32) * 0.02
        b = jax.random.normal(kb, (out_f,), jnp.float32) * 0.02
        return w, b

    qkv_w, qkv_b = lin(ks[0], ks[1], 3 * dim, dim)
    proj_w, proj_b = lin(ks[2], ks[3], dim, dim)
    lin1_w, lin1_b = lin(ks[4], ks[5], mlp_dim, dim)
    lin2_w, lin2_b = lin(ks[6], ks[7], dim, mlp_dim)
    n1_w = 1.0 + 0.1 * jax.random.normal(ks[8], (dim,), jnp.float32)
    n2_w = 1.0 + 0.1 * jax.random.normal(ks[9], (dim,), jnp.float32)
    n1_b = jnp.zeros((dim,), jnp.float32)
    n2_b = jnp.zeros((dim,), jnp.float32)
    return dict(n1_w=n1_w, n1_b=n1_b, qkv_w=qkv_w, qkv_b=qkv_b,
                proj_w=proj_w, proj_b=proj_b, n2_w=n2_w, n2_b=n2_b,
                lin1_w=lin1_w, lin1_b=lin1_b, lin2_w=lin2_w, lin2_b=lin2_b)


def ref_block(x, p, num_heads):
    """Pure-JAX f32 reference replicating the PyTorch Block forward."""
    B, H, W, C = x.shape
    N = H * W
    hd = C // num_heads
    scale = hd ** -0.5
    xf = x.reshape(B, N, C)

    def ln(t, w, b):
        mu = t.mean(-1, keepdims=True)
        var = ((t - mu) ** 2).mean(-1, keepdims=True)
        return (t - mu) / jnp.sqrt(var + 1e-5) * w + b

    h = ln(xf, p["n1_w"], p["n1_b"])
    qkv = h @ p["qkv_w"].T + p["qkv_b"]                       # (B, N, 3C)
    qkv = qkv.reshape(B, N, 3, num_heads, hd).transpose(2, 0, 3, 1, 4)
    q, k, v = qkv[0], qkv[1], qkv[2]                          # (B, nH, N, hd)
    attn = jnp.einsum("bhnd,bhmd->bhnm", q * scale, k)
    attn = jax.nn.softmax(attn, axis=-1)
    out = jnp.einsum("bhnm,bhmd->bhnd", attn, v)
    out = out.transpose(0, 2, 1, 3).reshape(B, N, C)
    out = out @ p["proj_w"].T + p["proj_b"]
    x2 = xf + out
    h2 = ln(x2, p["n2_w"], p["n2_b"])
    m = h2 @ p["lin1_w"].T + p["lin1_b"]
    m = 0.5 * m * (1.0 + jax.scipy.special.erf(m / jnp.sqrt(2.0)))
    m = m @ p["lin2_w"].T + p["lin2_b"]
    return (x2 + m).reshape(B, H, W, C)


if __name__ == "__main__":
    B, H, W = 2, 8, 8
    dim, num_heads, mlp_ratio = 32, 4, 4.0
    mlp_dim = int(dim * mlp_ratio)

    key = jax.random.PRNGKey(0)
    kx, kp = jax.random.split(key)
    x = jax.random.normal(kx, (B, H, W, dim), jnp.float32)
    params = init_params(kp, dim, mlp_dim)

    out = sam_block_forward(x, params, num_heads)
    out = jax.block_until_ready(out)

    ref = jax.block_until_ready(ref_block(x, params, num_heads))
    assert out.shape == (B, H, W, dim)
    assert bool(jnp.allclose(out, ref, atol=5e-2, rtol=5e-2)), "mismatch vs reference"

    print("KERNEL_OK")
</pallas_src>

<mosaic_0001>
module attributes {stable_mosaic.version = 11 : i64} {
  func.func @qkv_kernel(%arg0: i32, %arg1: i32, %arg2: memref<1x64x32xf32, #tpu.memory_space<vmem>>, %arg3: memref<1x32xf32, #tpu.memory_space<vmem>>, %arg4: memref<1x32xf32, #tpu.memory_space<vmem>>, %arg5: memref<32x96xbf16, #tpu.memory_space<vmem>>, %arg6: memref<1x96xf32, #tpu.memory_space<vmem>>, %arg7: memref<1x4x64x8xbf16, #tpu.memory_space<vmem>>, %arg8: memref<1x4x64x8xbf16, #tpu.memory_space<vmem>>, %arg9: memref<1x4x64x8xbf16, #tpu.memory_space<vmem>>) attributes {dimension_semantics = [#tpu.dimension_semantics<parallel>, #tpu.dimension_semantics<parallel>], iteration_bounds = array<i64: 2, 1>, scalar_prefetch = 0 : i64, scratch_operands = 0 : i64, tpu.core_type = #tpu.core_type<tc>, window_params = [{transform_indices = @transform_0, window_bounds = array<i64: 1, 64, 32>}, {pipeline_mode = #tpu.pipeline_mode<synchronous>, transform_indices = @transform_1, window_bounds = array<i64: 1, 32>}, {pipeline_mode = #tpu.pipeline_mode<synchronous>, transform_indices = @transform_2, window_bounds = array<i64: 1, 32>}, {pipeline_mode = #tpu.pipeline_mode<synchronous>, transform_indices = @transform_3, window_bounds = array<i64: 32, 96>}, {pipeline_mode = #tpu.pipeline_mode<synchronous>, transform_indices = @transform_4, window_bounds = array<i64: 1, 96>}, {transform_indices = @transform_5, window_bounds = array<i64: 1, 4, 64, 8>}, {transform_indices = @transform_6, window_bounds = array<i64: 1, 4, 64, 8>}, {transform_indices = @transform_7, window_bounds = array<i64: 1, 4, 64, 8>}]} {
    %c0 = arith.constant 0 : index
    %c0_0 = arith.constant 0 : index
    %c0_1 = arith.constant 0 : index
    %0 = vector.load %arg2[%c0, %c0_0, %c0_1] : memref<1x64x32xf32, #tpu.memory_space<vmem>>, vector<1x64x32xf32>
    %1 = vector.shape_cast %0 : vector<1x64x32xf32> to vector<64x32xf32>
    %c0_2 = arith.constant 0 : index
    %c0_3 = arith.constant 0 : index
    %2 = vector.load %arg3[%c0_2, %c0_3] : memref<1x32xf32, #tpu.memory_space<vmem>>, vector<1x32xf32>
    %c0_4 = arith.constant 0 : index
    %c0_5 = arith.constant 0 : index
    %3 = vector.load %arg4[%c0_4, %c0_5] : memref<1x32xf32, #tpu.memory_space<vmem>>, vector<1x32xf32>
    %cst = arith.constant dense<0.000000e+00> : vector<64xf32>
    %4 = vector.multi_reduction <add>, %1, %cst [1] : vector<64x32xf32> to vector<64xf32>
    %5 = vector.shape_cast %4 : vector<64xf32> to vector<64x1xf32>
    %cst_6 = arith.constant 3.200000e+01 : f32
    %6 = vector.broadcast %cst_6 : f32 to vector<64x1xf32>
    %7 = arith.divf %5, %6 : vector<64x1xf32>
    %8 = vector.broadcast %7 : vector<64x1xf32> to vector<64x32xf32>
    %9 = arith.subf %1, %8 : vector<64x32xf32>
    %10 = arith.mulf %9, %9 : vector<64x32xf32>
    %cst_7 = arith.constant dense<0.000000e+00> : vector<64xf32>
    %11 = vector.multi_reduction <add>, %10, %cst_7 [1] : vector<64x32xf32> to vector<64xf32>
    %12 = vector.shape_cast %11 : vector<64xf32> to vector<64x1xf32>
    %cst_8 = arith.constant 3.200000e+01 : f32
    %13 = vector.broadcast %cst_8 : f32 to vector<64x1xf32>
    %14 = arith.divf %12, %13 : vector<64x1xf32>
    %15 = vector.broadcast %7 : vector<64x1xf32> to vector<64x32xf32>
    %16 = arith.subf %1, %15 : vector<64x32xf32>
    %cst_9 = arith.constant 9.99999974E-6 : f32
    %17 = vector.broadcast %cst_9 : f32 to vector<64x1xf32>
    %18 = arith.addf %14, %17 : vector<64x1xf32>
    %19 = math.rsqrt %18 : vector<64x1xf32>
    %20 = vector.broadcast %19 : vector<64x1xf32> to vector<64x32xf32>
    %21 = arith.mulf %16, %20 : vector<64x32xf32>
    %22 = vector.broadcast %2 : vector<1x32xf32> to vector<64x32xf32>
    %23 = arith.mulf %21, %22 : vector<64x32xf32>
    %24 = vector.broadcast %3 : vector<1x32xf32> to vector<64x32xf32>
    %25 = arith.addf %23, %24 : vector<64x32xf32>
    %26 = arith.truncf %25 : vector<64x32xf32> to vector<64x32xbf16>
    %c0_10 = arith.constant 0 : index
    %c0_11 = arith.constant 0 : index
    %27 = vector.load %arg5[%c0_10, %c0_11] : memref<32x96xbf16, #tpu.memory_space<vmem>>, vector<32x96xbf16>
    %cst_12 = arith.constant dense<0.000000e+00> : vector<64x96xf32>
    %28 = tpu.matmul %26, %27, %cst_12 {dimension_numbers = #tpu.dot_dimension_numbers<[1], [0], [0], [1], [0, 0, 1, 1], [], []>} : vector<64x32xbf16>, vector<32x96xbf16>, vector<64x96xf32> -> vector<64x96xf32>
    %c0_13 = arith.constant 0 : index
    %c0_14 = arith.constant 0 : index
    %29 = vector.load %arg6[%c0_13, %c0_14] : memref<1x96xf32, #tpu.memory_space<vmem>>, vector<1x96xf32>
    %30 = vector.broadcast %29 : vector<1x96xf32> to vector<64x96xf32>
    %31 = arith.addf %28, %30 : vector<64x96xf32>
    %32 = arith.truncf %31 : vector<64x96xf32> to vector<64x96xbf16>
    %33 = vector.extract_strided_slice %32 {offsets = [0, 0], sizes = [64, 8], strides = [1, 1]} : vector<64x96xbf16> to vector<64x8xbf16>
    %c0_15 = arith.constant 0 : index
    %c0_16 = arith.constant 0 : index
    %c0_17 = arith.constant 0 : index
    %c0_18 = arith.constant 0 : index
    %34 = vector.load %arg7[%c0_15, %c0_16, %c0_17, %c0_18] : memref<1x4x64x8xbf16, #tpu.memory_space<vmem>>, vector<1x1x64x8xbf16>
    %35 = vector.shape_cast %34 : vector<1x1x64x8xbf16> to vector<64x8xbf16>
    %36 = vector.shape_cast %33 : vector<64x8xbf16> to vector<1x1x64x8xbf16>
    tpu.vector_store %arg7[%c0_15, %c0_16, %c0_17, %c0_18], %36 {strides = array<i32>} : memref<1x4x64x8xbf16, #tpu.memory_space<vmem>>, vector<1x1x64x8xbf16>,
    %37 = vector.extract_strided_slice %32 {offsets = [0, 32], sizes = [64, 8], strides = [1, 1]} : vector<64x96xbf16> to vector<64x8xbf16>
    %c0_19 = arith.constant 0 : index
    %c0_20 = arith.constant 0 : index
    %c0_21 = arith.constant 0 : index
    %c0_22 = arith.constant 0 : index
    %38 = vector.load %arg8[%c0_19, %c0_20, %c0_21, %c0_22] : memref<1x4x64x8xbf16, #tpu.memory_space<vmem>>, vector<1x1x64x8xbf16>
    %39 = vector.shape_cast %38 : vector<1x1x64x8xbf16> to vector<64x8xbf16>
    %40 = vector.shape_cast %37 : vector<64x8xbf16> to vector<1x1x64x8xbf16>
    tpu.vector_store %arg8[%c0_19, %c0_20, %c0_21, %c0_22], %40 {strides = array<i32>} : memref<1x4x64x8xbf16, #tpu.memory_space<vmem>>, vector<1x1x64x8xbf16>,
    %41 = vector.extract_strided_slice %32 {offsets = [0, 64], sizes = [64, 8], strides = [1, 1]} : vector<64x96xbf16> to vector<64x8xbf16>
    %c0_23 = arith.constant 0 : index
    %c0_24 = arith.constant 0 : index
    %c0_25 = arith.constant 0 : index
    %c0_26 = arith.constant 0 : index
    %42 = vector.load %arg9[%c0_23, %c0_24, %c0_25, %c0_26] : memref<1x4x64x8xbf16, #tpu.memory_space<vmem>>, vector<1x1x64x8xbf16>
    %43 = vector.shape_cast %42 : vector<1x1x64x8xbf16> to vector<64x8xbf16>
    %44 = vector.shape_cast %41 : vector<64x8xbf16> to vector<1x1x64x8xbf16>
    tpu.vector_store %arg9[%c0_23, %c0_24, %c0_25, %c0_26], %44 {strides = array<i32>} : memref<1x4x64x8xbf16, #tpu.memory_space<vmem>>, vector<1x1x64x8xbf16>,
    %45 = vector.extract_strided_slice %32 {offsets = [0, 8], sizes = [64, 8], strides = [1, 1]} : vector<64x96xbf16> to vector<64x8xbf16>
    %c0_27 = arith.constant 0 : index
    %c1 = arith.constant 1 : index
    %c0_28 = arith.constant 0 : index
    %c0_29 = arith.constant 0 : index
    %46 = vector.load %arg7[%c0_27, %c1, %c0_28, %c0_29] : memref<1x4x64x8xbf16, #tpu.memory_space<vmem>>, vector<1x1x64x8xbf16>
    %47 = vector.shape_cast %46 : vector<1x1x64x8xbf16> to vector<64x8xbf16>
    %48 = vector.shape_cast %45 : vector<64x8xbf16> to vector<1x1x64x8xbf16>
    tpu.vector_store %arg7[%c0_27, %c1, %c0_28, %c0_29], %48 {strides = array<i32>} : memref<1x4x64x8xbf16, #tpu.memory_space<vmem>>, vector<1x1x64x8xbf16>,
    %49 = vector.extract_strided_slice %32 {offsets = [0, 40], sizes = [64, 8], strides = [1, 1]} : vector<64x96xbf16> to vector<64x8xbf16>
    %c0_30 = arith.constant 0 : index
    %c1_31 = arith.constant 1 : index
    %c0_32 = arith.constant 0 : index
    %c0_33 = arith.constant 0 : index
    %50 = vector.load %arg8[%c0_30, %c1_31, %c0_32, %c0_33] : memref<1x4x64x8xbf16, #tpu.memory_space<vmem>>, vector<1x1x64x8xbf16>
    %51 = vector.shape_cast %50 : vector<1x1x64x8xbf16> to vector<64x8xbf16>
    %52 = vector.shape_cast %49 : vector<64x8xbf16> to vector<1x1x64x8xbf16>
    tpu.vector_store %arg8[%c0_30, %c1_31, %c0_32, %c0_33], %52 {strides = array<i32>} : memref<1x4x64x8xbf16, #tpu.memory_space<vmem>>, vector<1x1x64x8xbf16>,
    %53 = vector.extract_strided_slice %32 {offsets = [0, 72], sizes = [64, 8], strides = [1, 1]} : vector<64x96xbf16> to vector<64x8xbf16>
    %c0_34 = arith.constant 0 : index
    %c1_35 = arith.constant 1 : index
    %c0_36 = arith.constant 0 : index
    %c0_37 = arith.constant 0 : index
    %54 = vector.load %arg9[%c0_34, %c1_35, %c0_36, %c0_37] : memref<1x4x64x8xbf16, #tpu.memory_space<vmem>>, vector<1x1x64x8xbf16>
    %55 = vector.shape_cast %54 : vector<1x1x64x8xbf16> to vector<64x8xbf16>
    %56 = vector.shape_cast %53 : vector<64x8xbf16> to vector<1x1x64x8xbf16>
    tpu.vector_store %arg9[%c0_34, %c1_35, %c0_36, %c0_37], %56 {strides = array<i32>} : memref<1x4x64x8xbf16, #tpu.memory_space<vmem>>, vector<1x1x64x8xbf16>,
    %57 = vector.extract_strided_slice %32 {offsets = [0, 16], sizes = [64, 8], strides = [1, 1]} : vector<64x96xbf16> to vector<64x8xbf16>
    %c0_38 = arith.constant 0 : index
    %c2 = arith.constant 2 : index
    %c0_39 = arith.constant 0 : index
    %c0_40 = arith.constant 0 : index
    %58 = vector.load %arg7[%c0_38, %c2, %c0_39, %c0_40] : memref<1x4x64x8xbf16, #tpu.memory_space<vmem>>, vector<1x1x64x8xbf16>
    %59 = vector.shape_cast %58 : vector<1x1x64x8xbf16> to vector<64x8xbf16>
    %60 = vector.shape_cast %57 : vector<64x8xbf16> to vector<1x1x64x8xbf16>
    tpu.vector_store %arg7[%c0_38, %c2, %c0_39, %c0_40], %60 {strides = array<i32>} : memref<1x4x64x8xbf16, #tpu.memory_space<vmem>>, vector<1x1x64x8xbf16>,
    %61 = vector.extract_strided_slice %32 {offsets = [0, 48], sizes = [64, 8], strides = [1, 1]} : vector<64x96xbf16> to vector<64x8xbf16>
    %c0_41 = arith.constant 0 : index
    %c2_42 = arith.constant 2 : index
    %c0_43 = arith.constant 0 : index
    %c0_44 = arith.constant 0 : index
    %62 = vector.load %arg8[%c0_41, %c2_42, %c0_43, %c0_44] : memref<1x4x64x8xbf16, #tpu.memory_space<vmem>>, vector<1x1x64x8xbf16>
    %63 = vector.shape_cast %62 : vector<1x1x64x8xbf16> to vector<64x8xbf16>
    %64 = vector.shape_cast %61 : vector<64x8xbf16> to vector<1x1x64x8xbf16>
    tpu.vector_store %arg8[%c0_41, %c2_42, %c0_43, %c0_44], %64 {strides = array<i32>} : memref<1x4x64x8xbf16, #tpu.memory_space<vmem>>, vector<1x1x64x8xbf16>,
    %65 = vector.extract_strided_slice %32 {offsets = [0, 80], sizes = [64, 8], strides = [1, 1]} : vector<64x96xbf16> to vector<64x8xbf16>
    %c0_45 = arith.constant 0 : index
    %c2_46 = arith.constant 2 : index
    %c0_47 = arith.constant 0 : index
    %c0_48 = arith.constant 0 : index
    %66 = vector.load %arg9[%c0_45, %c2_46, %c0_47, %c0_48] : memref<1x4x64x8xbf16, #tpu.memory_space<vmem>>, vector<1x1x64x8xbf16>
    %67 = vector.shape_cast %66 : vector<1x1x64x8xbf16> to vector<64x8xbf16>
    %68 = vector.shape_cast %65 : vector<64x8xbf16> to vector<1x1x64x8xbf16>
    tpu.vector_store %arg9[%c0_45, %c2_46, %c0_47, %c0_48], %68 {strides = array<i32>} : memref<1x4x64x8xbf16, #tpu.memory_space<vmem>>, vector<1x1x64x8xbf16>,
    %69 = vector.extract_strided_slice %32 {offsets = [0, 24], sizes = [64, 8], strides = [1, 1]} : vector<64x96xbf16> to vector<64x8xbf16>
    %c0_49 = arith.constant 0 : index
    %c3 = arith.constant 3 : index
    %c0_50 = arith.constant 0 : index
    %c0_51 = arith.constant 0 : index
    %70 = vector.load %arg7[%c0_49, %c3, %c0_50, %c0_51] : memref<1x4x64x8xbf16, #tpu.memory_space<vmem>>, vector<1x1x64x8xbf16>
    %71 = vector.shape_cast %70 : vector<1x1x64x8xbf16> to vector<64x8xbf16>
    %72 = vector.shape_cast %69 : vector<64x8xbf16> to vector<1x1x64x8xbf16>
    tpu.vector_store %arg7[%c0_49, %c3, %c0_50, %c0_51], %72 {strides = array<i32>} : memref<1x4x64x8xbf16, #tpu.memory_space<vmem>>, vector<1x1x64x8xbf16>,
    %73 = vector.extract_strided_slice %32 {offsets = [0, 56], sizes = [64, 8], strides = [1, 1]} : vector<64x96xbf16> to vector<64x8xbf16>
    %c0_52 = arith.constant 0 : index
    %c3_53 = arith.constant 3 : index
    %c0_54 = arith.constant 0 : index
    %c0_55 = arith.constant 0 : index
    %74 = vector.load %arg8[%c0_52, %c3_53, %c0_54, %c0_55] : memref<1x4x64x8xbf16, #tpu.memory_space<vmem>>, vector<1x1x64x8xbf16>
    %75 = vector.shape_cast %74 : vector<1x1x64x8xbf16> to vector<64x8xbf16>
    %76 = vector.shape_cast %73 : vector<64x8xbf16> to vector<1x1x64x8xbf16>
    tpu.vector_store %arg8[%c0_52, %c3_53, %c0_54, %c0_55], %76 {strides = array<i32>} : memref<1x4x64x8xbf16, #tpu.memory_space<vmem>>, vector<1x1x64x8xbf16>,
    %77 = vector.extract_strided_slice %32 {offsets = [0, 88], sizes = [64, 8], strides = [1, 1]} : vector<64x96xbf16> to vector<64x8xbf16>
    %c0_56 = arith.constant 0 : index
    %c3_57 = arith.constant 3 : index
    %c0_58 = arith.constant 0 : index
    %c0_59 = arith.constant 0 : index
    %78 = vector.load %arg9[%c0_56, %c3_57, %c0_58, %c0_59] : memref<1x4x64x8xbf16, #tpu.memory_space<vmem>>, vector<1x1x64x8xbf16>
    %79 = vector.shape_cast %78 : vector<1x1x64x8xbf16> to vector<64x8xbf16>
    %80 = vector.shape_cast %77 : vector<64x8xbf16> to vector<1x1x64x8xbf16>
    tpu.vector_store %arg9[%c0_56, %c3_57, %c0_58, %c0_59], %80 {strides = array<i32>} : memref<1x4x64x8xbf16, #tpu.memory_space<vmem>>, vector<1x1x64x8xbf16>,
    return
  }
  func.func @transform_0(%arg0: i32, %arg1: i32) -> (i32, i32, i32) {
    %c0_i32 = arith.constant 0 : i32
    %c0_i32_0 = arith.constant 0 : i32
    return %arg0, %arg1, %c0_i32 : i32, i32, i32
  }
  func.func @transform_1(%arg0: i32, %arg1: i32) -> (i32, i32) {
    %c0_i32 = arith.constant 0 : i32
    %c0_i32_0 = arith.constant 0 : i32
    %c0_i32_1 = arith.constant 0 : i32
    return %c0_i32, %c0_i32_0 : i32, i32
  }
  func.func @transform_2(%arg0: i32, %arg1: i32) -> (i32, i32) {
    %c0_i32 = arith.constant 0 : i32
    %c0_i32_0 = arith.constant 0 : i32
    %c0_i32_1 = arith.constant 0 : i32
    return %c0_i32, %c0_i32_0 : i32, i32
  }
  func.func @transform_3(%arg0: i32, %arg1: i32) -> (i32, i32) {
    %c0_i32 = arith.constant 0 : i32
    %c0_i32_0 = arith.constant 0 : i32
    %c0_i32_1 = arith.constant 0 : i32
    return %c0_i32, %c0_i32_0 : i32, i32
  }
  func.func @transform_4(%arg0: i32, %arg1: i32) -> (i32, i32) {
    %c0_i32 = arith.constant 0 : i32
    %c0_i32_0 = arith.constant 0 : i32
    %c0_i32_1 = arith.constant 0 : i32
    return %c0_i32, %c0_i32_0 : i32, i32
  }
  func.func @transform_5(%arg0: i32, %arg1: i32) -> (i32, i32, i32, i32) {
    %c0_i32 = arith.constant 0 : i32
    %c0_i32_0 = arith.constant 0 : i32
    %c0_i32_1 = arith.constant 0 : i32
    return %arg0, %c0_i32, %arg1, %c0_i32_0 : i32, i32, i32, i32
  }
  func.func @transform_6(%arg0: i32, %arg1: i32) -> (i32, i32, i32, i32) {
    %c0_i32 = arith.constant 0 : i32
    %c0_i32_0 = arith.constant 0 : i32
    %c0_i32_1 = arith.constant 0 : i32
    return %arg0, %c0_i32, %arg1, %c0_i32_0 : i32, i32, i32, i32
  }
  func.func @transform_7(%arg0: i32, %arg1: i32) -> (i32, i32, i32, i32) {
    %c0_i32 = arith.constant 0 : i32
    %c0_i32_0 = arith.constant 0 : i32
    %c0_i32_1 = arith.constant 0 : i32
    return %arg0, %c0_i32, %arg1, %c0_i32_0 : i32, i32, i32, i32
  }
}

module attributes {stable_mosaic.version = 11 : i64} {
  func.func @qkv_kernel(%arg0: i32, %arg1: i32, %arg2: memref<1x64x32xf32, #tpu.memory_space<vmem>>, %arg3: memref<1x32xf32, #tpu.memory_space<vmem>>, %arg4: memref<1x32xf32, #tpu.memory_space<vmem>>, %arg5: memref<32x96xbf16, #tpu.memory_space<vmem>>, %arg6: memref<1x96xf32, #tpu.memory_space<vmem>>, %arg7: memref<1x4x64x8xbf16, #tpu.memory_space<vmem>>, %arg8: memref<1x4x64x8xbf16, #tpu.memory_space<vmem>>, %arg9: memref<1x4x64x8xbf16, #tpu.memory_space<vmem>>) attributes {dimension_semantics = [#tpu.dimension_semantics<parallel>, #tpu.dimension_semantics<parallel>], iteration_bounds = array<i64: 2, 1>, scalar_prefetch = 0 : i64, scratch_operands = 0 : i64, tpu.core_type = #tpu.core_type<tc>, window_params = [{transform_indices = @transform_0, window_bounds = array<i64: 1, 64, 32>}, {pipeline_mode = #tpu.pipeline_mode<synchronous>, transform_indices = @transform_1, window_bounds = array<i64: 1, 32>}, {pipeline_mode = #tpu.pipeline_mode<synchronous>, transform_indices = @transform_2, window_bounds = array<i64: 1, 32>}, {pipeline_mode = #tpu.pipeline_mode<synchronous>, transform_indices = @transform_3, window_bounds = array<i64: 32, 96>}, {pipeline_mode = #tpu.pipeline_mode<synchronous>, transform_indices = @transform_4, window_bounds = array<i64: 1, 96>}, {transform_indices = @transform_5, window_bounds = array<i64: 1, 4, 64, 8>}, {transform_indices = @transform_6, window_bounds = array<i64: 1, 4, 64, 8>}, {transform_indices = @transform_7, window_bounds = array<i64: 1, 4, 64, 8>}]} {
    %c0 = arith.constant 0 : index
    %c0_0 = arith.constant 0 : index
    %c0_1 = arith.constant 0 : index
    %0 = vector.load %arg2[%c0, %c0_0, %c0_1] : memref<1x64x32xf32, #tpu.memory_space<vmem>>, vector<1x64x32xf32>
    %1 = vector.shape_cast %0 : vector<1x64x32xf32> to vector<64x32xf32>
    %c0_2 = arith.constant 0 : index
    %c0_3 = arith.constant 0 : index
    %2 = vector.load %arg3[%c0_2, %c0_3] : memref<1x32xf32, #tpu.memory_space<vmem>>, vector<1x32xf32>
    %c0_4 = arith.constant 0 : index
    %c0_5 = arith.constant 0 : index
    %3 = vector.load %arg4[%c0_4, %c0_5] : memref<1x32xf32, #tpu.memory_space<vmem>>, vector<1x32xf32>
    %cst = arith.constant dense<0.000000e+00> : vector<64xf32>
    %4 = vector.multi_reduction <add>, %1, %cst [1] : vector<64x32xf32> to vector<64xf32>
    %5 = vector.shape_cast %4 : vector<64xf32> to vector<64x1xf32>
    %cst_6 = arith.constant 3.200000e+01 : f32
    %6 = vector.broadcast %cst_6 : f32 to vector<64x1xf32>
    %7 = arith.divf %5, %6 : vector<64x1xf32>
    %8 = vector.broadcast %7 : vector<64x1xf32> to vector<64x32xf32>
    %9 = arith.subf %1, %8 : vector<64x32xf32>
    %10 = arith.mulf %9, %9 : vector<64x32xf32>
    %cst_7 = arith.constant dense<0.000000e+00> : vector<64xf32>
    %11 = vector.multi_reduction <add>, %10, %cst_7 [1] : vector<64x32xf32> to vector<64xf32>
    %12 = vector.shape_cast %11 : vector<64xf32> to vector<64x1xf32>
    %cst_8 = arith.constant 3.200000e+01 : f32
    %13 = vector.broadcast %cst_8 : f32 to vector<64x1xf32>
    %14 = arith.divf %12, %13 : vector<64x1xf32>
    %15 = vector.broadcast %7 : vector<64x1xf32> to vector<64x32xf32>
    %16 = arith.subf %1, %15 : vector<64x32xf32>
    %cst_9 = arith.constant 9.99999974E-6 : f32
    %17 = vector.broadcast %cst_9 : f32 to vector<64x1xf32>
    %18 = arith.addf %14, %17 : vector<64x1xf32>
    %19 = math.rsqrt %18 : vector<64x1xf32>
    %20 = vector.broadcast %19 : vector<64x1xf32> to vector<64x32xf32>
    %21 = arith.mulf %16, %20 : vector<64x32xf32>
    %22 = vector.broadcast %2 : vector<1x32xf32> to vector<64x32xf32>
    %23 = arith.mulf %21, %22 : vector<64x32xf32>
    %24 = vector.broadcast %3 : vector<1x32xf32> to vector<64x32xf32>
    %25 = arith.addf %23, %24 : vector<64x32xf32>
    %26 = arith.truncf %25 : vector<64x32xf32> to vector<64x32xbf16>
    %c0_10 = arith.constant 0 : index
    %c0_11 = arith.constant 0 : index
    %27 = vector.load %arg5[%c0_10, %c0_11] : memref<32x96xbf16, #tpu.memory_space<vmem>>, vector<32x96xbf16>
    %cst_12 = arith.constant dense<0.000000e+00> : vector<64x96xf32>
    %28 = tpu.matmul %26, %27, %cst_12 {dimension_numbers = #tpu.dot_dimension_numbers<[1], [0], [0], [1], [0, 0, 1, 1], [], []>} : vector<64x32xbf16>, vector<32x96xbf16>, vector<64x96xf32> -> vector<64x96xf32>
    %c0_13 = arith.constant 0 : index
    %c0_14 = arith.constant 0 : index
    %29 = vector.load %arg6[%c0_13, %c0_14] : memref<1x96xf32, #tpu.memory_space<vmem>>, vector<1x96xf32>
    %30 = vector.broadcast %29 : vector<1x96xf32> to vector<64x96xf32>
    %31 = arith.addf %28, %30 : vector<64x96xf32>
    %32 = arith.truncf %31 : vector<64x96xf32> to vector<64x96xbf16>
    %33 = vector.extract_strided_slice %32 {offsets = [0, 0], sizes = [64, 8], strides = [1, 1]} : vector<64x96xbf16> to vector<64x8xbf16>
    %c0_15 = arith.constant 0 : index
    %c0_16 = arith.constant 0 : index
    %c0_17 = arith.constant 0 : index
    %c0_18 = arith.constant 0 : index
    %34 = vector.load %arg7[%c0_15, %c0_16, %c0_17, %c0_18] : memref<1x4x64x8xbf16, #tpu.memory_space<vmem>>, vector<1x1x64x8xbf16>
    %35 = vector.shape_cast %34 : vector<1x1x64x8xbf16> to vector<64x8xbf16>
    %36 = vector.shape_cast %33 : vector<64x8xbf16> to vector<1x1x64x8xbf16>
    tpu.vector_store %arg7[%c0_15, %c0_16, %c0_17, %c0_18], %36 {strides = array<i32>} : memref<1x4x64x8xbf16, #tpu.memory_space<vmem>>, vector<1x1x64x8xbf16>,
    %37 = vector.extract_strided_slice %32 {offsets = [0, 32], sizes = [64, 8], strides = [1, 1]} : vector<64x96xbf16> to vector<64x8xbf16>
    %c0_19 = arith.constant 0 : index
    %c0_20 = arith.constant 0 : index
    %c0_21 = arith.constant 0 : index
    %c0_22 = arith.constant 0 : index
    %38 = vector.load %arg8[%c0_19, %c0_20, %c0_21, %c0_22] : memref<1x4x64x8xbf16, #tpu.memory_space<vmem>>, vector<1x1x64x8xbf16>
    %39 = vector.shape_cast %38 : vector<1x1x64x8xbf16> to vector<64x8xbf16>
    %40 = vector.shape_cast %37 : vector<64x8xbf16> to vector<1x1x64x8xbf16>
    tpu.vector_store %arg8[%c0_19, %c0_20, %c0_21, %c0_22], %40 {strides = array<i32>} : memref<1x4x64x8xbf16, #tpu.memory_space<vmem>>, vector<1x1x64x8xbf16>,
    %41 = vector.extract_strided_slice %32 {offsets = [0, 64], sizes = [64, 8], strides = [1, 1]} : vector<64x96xbf16> to vector<64x8xbf16>
    %c0_23 = arith.constant 0 : index
    %c0_24 = arith.constant 0 : index
    %c0_25 = arith.constant 0 : index
    %c0_26 = arith.constant 0 : index
    %42 = vector.load %arg9[%c0_23, %c0_24, %c0_25, %c0_26] : memref<1x4x64x8xbf16, #tpu.memory_space<vmem>>, vector<1x1x64x8xbf16>
    %43 = vector.shape_cast %42 : vector<1x1x64x8xbf16> to vector<64x8xbf16>
    %44 = vector.shape_cast %41 : vector<64x8xbf16> to vector<1x1x64x8xbf16>
    tpu.vector_store %arg9[%c0_23, %c0_24, %c0_25, %c0_26], %44 {strides = array<i32>} : memref<1x4x64x8xbf16, #tpu.memory_space<vmem>>, vector<1x1x64x8xbf16>,
    %45 = vector.extract_strided_slice %32 {offsets = [0, 8], sizes = [64, 8], strides = [1, 1]} : vector<64x96xbf16> to vector<64x8xbf16>
    %c0_27 = arith.constant 0 : index
    %c1 = arith.constant 1 : index
    %c0_28 = arith.constant 0 : index
    %c0_29 = arith.constant 0 : index
    %46 = vector.load %arg7[%c0_27, %c1, %c0_28, %c0_29] : memref<1x4x64x8xbf16, #tpu.memory_space<vmem>>, vector<1x1x64x8xbf16>
    %47 = vector.shape_cast %46 : vector<1x1x64x8xbf16> to vector<64x8xbf16>
    %48 = vector.shape_cast %45 : vector<64x8xbf16> to vector<1x1x64x8xbf16>
    tpu.vector_store %arg7[%c0_27, %c1, %c0_28, %c0_29], %48 {strides = array<i32>} : memref<1x4x64x8xbf16, #tpu.memory_space<vmem>>, vector<1x1x64x8xbf16>,
    %49 = vector.extract_strided_slice %32 {offsets = [0, 40], sizes = [64, 8], strides = [1, 1]} : vector<64x96xbf16> to vector<64x8xbf16>
    %c0_30 = arith.constant 0 : index
    %c1_31 = arith.constant 1 : index
    %c0_32 = arith.constant 0 : index
    %c0_33 = arith.constant 0 : index
    %50 = vector.load %arg8[%c0_30, %c1_31, %c0_32, %c0_33] : memref<1x4x64x8xbf16, #tpu.memory_space<vmem>>, vector<1x1x64x8xbf16>
    %51 = vector.shape_cast %50 : vector<1x1x64x8xbf16> to vector<64x8xbf16>
    %52 = vector.shape_cast %49 : vector<64x8xbf16> to vector<1x1x64x8xbf16>
    tpu.vector_store %arg8[%c0_30, %c1_31, %c0_32, %c0_33], %52 {strides = array<i32>} : memref<1x4x64x8xbf16, #tpu.memory_space<vmem>>, vector<1x1x64x8xbf16>,
    %53 = vector.extract_strided_slice %32 {offsets = [0, 72], sizes = [64, 8], strides = [1, 1]} : vector<64x96xbf16> to vector<64x8xbf16>
    %c0_34 = arith.constant 0 : index
    %c1_35 = arith.constant 1 : index
    %c0_36 = arith.constant 0 : index
    %c0_37 = arith.constant 0 : index
    %54 = vector.load %arg9[%c0_34, %c1_35, %c0_36, %c0_37] : memref<1x4x64x8xbf16, #tpu.memory_space<vmem>>, vector<1x1x64x8xbf16>
    %55 = vector.shape_cast %54 : vector<1x1x64x8xbf16> to vector<64x8xbf16>
    %56 = vector.shape_cast %53 : vector<64x8xbf16> to vector<1x1x64x8xbf16>
    tpu.vector_store %arg9[%c0_34, %c1_35, %c0_36, %c0_37], %56 {strides = array<i32>} : memref<1x4x64x8xbf16, #tpu.memory_space<vmem>>, vector<1x1x64x8xbf16>,
    %57 = vector.extract_strided_slice %32 {offsets = [0, 16], sizes = [64, 8], strides = [1, 1]} : vector<64x96xbf16> to vector<64x8xbf16>
    %c0_38 = arith.constant 0 : index
    %c2 = arith.constant 2 : index
    %c0_39 = arith.constant 0 : index
    %c0_40 = arith.constant 0 : index
    %58 = vector.load %arg7[%c0_38, %c2, %c0_39, %c0_40] : memref<1x4x64x8xbf16, #tpu.memory_space<vmem>>, vector<1x1x64x8xbf16>
    %59 = vector.shape_cast %58 : vector<1x1x64x8xbf16> to vector<64x8xbf16>
    %60 = vector.shape_cast %57 : vector<64x8xbf16> to vector<1x1x64x8xbf16>
    tpu.vector_store %arg7[%c0_38, %c2, %c0_39, %c0_40], %60 {strides = array<i32>} : memref<1x4x64x8xbf16, #tpu.memory_space<vmem>>, vector<1x1x64x8xbf16>,
    %61 = vector.extract_strided_slice %32 {offsets = [0, 48], sizes = [64, 8], strides = [1, 1]} : vector<64x96xbf16> to vector<64x8xbf16>
    %c0_41 = arith.constant 0 : index
    %c2_42 = arith.constant 2 : index
    %c0_43 = arith.constant 0 : index
    %c0_44 = arith.constant 0 : index
    %62 = vector.load %arg8[%c0_41, %c2_42, %c0_43, %c0_44] : memref<1x4x64x8xbf16, #tpu.memory_space<vmem>>, vector<1x1x64x8xbf16>
    %63 = vector.shape_cast %62 : vector<1x1x64x8xbf16> to vector<64x8xbf16>
    %64 = vector.shape_cast %61 : vector<64x8xbf16> to vector<1x1x64x8xbf16>
    tpu.vector_store %arg8[%c0_41, %c2_42, %c0_43, %c0_44], %64 {strides = array<i32>} : memref<1x4x64x8xbf16, #tpu.memory_space<vmem>>, vector<1x1x64x8xbf16>,
    %65 = vector.extract_strided_slice %32 {offsets = [0, 80], sizes = [64, 8], strides = [1, 1]} : vector<64x96xbf16> to vector<64x8xbf16>
    %c0_45 = arith.constant 0 : index
    %c2_46 = arith.constant 2 : index
    %c0_47 = arith.constant 0 : index
    %c0_48 = arith.constant 0 : index
    %66 = vector.load %arg9[%c0_45, %c2_46, %c0_47, %c0_48] : memref<1x4x64x8xbf16, #tpu.memory_space<vmem>>, vector<1x1x64x8xbf16>
    %67 = vector.shape_cast %66 : vector<1x1x64x8xbf16> to vector<64x8xbf16>
    %68 = vector.shape_cast %65 : vector<64x8xbf16> to vector<1x1x64x8xbf16>
    tpu.vector_store %arg9[%c0_45, %c2_46, %c0_47, %c0_48], %68 {strides = array<i32>} : memref<1x4x64x8xbf16, #tpu.memory_space<vmem>>, vector<1x1x64x8xbf16>,
    %69 = vector.extract_strided_slice %32 {offsets = [0, 24], sizes = [64, 8], strides = [1, 1]} : vector<64x96xbf16> to vector<64x8xbf16>
    %c0_49 = arith.constant 0 : index
    %c3 = arith.constant 3 : index
    %c0_50 = arith.constant 0 : index
    %c0_51 = arith.constant 0 : index
    %70 = vector.load %arg7[%c0_49, %c3, %c0_50, %c0_51] : memref<1x4x64x8xbf16, #tpu.memory_space<vmem>>, vector<1x1x64x8xbf16>
    %71 = vector.shape_cast %70 : vector<1x1x64x8xbf16> to vector<64x8xbf16>
    %72 = vector.shape_cast %69 : vector<64x8xbf16> to vector<1x1x64x8xbf16>
    tpu.vector_store %arg7[%c0_49, %c3, %c0_50, %c0_51], %72 {strides = array<i32>} : memref<1x4x64x8xbf16, #tpu.memory_space<vmem>>, vector<1x1x64x8xbf16>,
    %73 = vector.extract_strided_slice %32 {offsets = [0, 56], sizes = [64, 8], strides = [1, 1]} : vector<64x96xbf16> to vector<64x8xbf16>
    %c0_52 = arith.constant 0 : index
    %c3_53 = arith.constant 3 : index
    %c0_54 = arith.constant 0 : index
    %c0_55 = arith.constant 0 : index
    %74 = vector.load %arg8[%c0_52, %c3_53, %c0_54, %c0_55] : memref<1x4x64x8xbf16, #tpu.memory_space<vmem>>, vector<1x1x64x8xbf16>
    %75 = vector.shape_cast %74 : vector<1x1x64x8xbf16> to vector<64x8xbf16>
    %76 = vector.shape_cast %73 : vector<64x8xbf16> to vector<1x1x64x8xbf16>
    tpu.vector_store %arg8[%c0_52, %c3_53, %c0_54, %c0_55], %76 {strides = array<i32>} : memref<1x4x64x8xbf16, #tpu.memory_space<vmem>>, vector<1x1x64x8xbf16>,
    %77 = vector.extract_strided_slice %32 {offsets = [0, 88], sizes = [64, 8], strides = [1, 1]} : vector<64x96xbf16> to vector<64x8xbf16>
    %c0_56 = arith.constant 0 : index
    %c3_57 = arith.constant 3 : index
    %c0_58 = arith.constant 0 : index
    %c0_59 = arith.constant 0 : index
    %78 = vector.load %arg9[%c0_56, %c3_57, %c0_58, %c0_59] : memref<1x4x64x8xbf16, #tpu.memory_space<vmem>>, vector<1x1x64x8xbf16>
    %79 = vector.shape_cast %78 : vector<1x1x64x8xbf16> to vector<64x8xbf16>
    %80 = vector.shape_cast %77 : vector<64x8xbf16> to vector<1x1x64x8xbf16>
    tpu.vector_store %arg9[%c0_56, %c3_57, %c0_58, %c0_59], %80 {strides = array<i32>} : memref<1x4x64x8xbf16, #tpu.memory_space<vmem>>, vector<1x1x64x8xbf16>,
    return
  }
  func.func @transform_0(%arg0: i32, %arg1: i32) -> (i32, i32, i32) {
    %c0_i32 = arith.constant 0 : i32
    %c0_i32_0 = arith.constant 0 : i32
    return %arg0, %arg1, %c0_i32 : i32, i32, i32
  }
  func.func @transform_1(%arg0: i32, %arg1: i32) -> (i32, i32) {
    %c0_i32 = arith.constant 0 : i32
    %c0_i32_0 = arith.constant 0 : i32
    %c0_i32_1 = arith.constant 0 : i32
    return %c0_i32, %c0_i32_0 : i32, i32
  }
  func.func @transform_2(%arg0: i32, %arg1: i32) -> (i32, i32) {
    %c0_i32 = arith.constant 0 : i32
    %c0_i32_0 = arith.constant 0 : i32
    %c0_i32_1 = arith.constant 0 : i32
    return %c0_i32, %c0_i32_0 : i32, i32
  }
  func.func @transform_3(%arg0: i32, %arg1: i32) -> (i32, i32) {
    %c0_i32 = arith.constant 0 : i32
    %c0_i32_0 = arith.constant 0 : i32
    %c0_i32_1 = arith.constant 0 : i32
    return %c0_i32, %c0_i32_0 : i32, i32
  }
  func.func @transform_4(%arg0: i32, %arg1: i32) -> (i32, i32) {
    %c0_i32 = arith.constant 0 : i32
    %c0_i32_0 = arith.constant 0 : i32
    %c0_i32_1 = arith.constant 0 : i32
    return %c0_i32, %c0_i32_0 : i32, i32
  }
  func.func @transform_5(%arg0: i32, %arg1: i32) -> (i32, i32, i32, i32) {
    %c0_i32 = arith.constant 0 : i32
    %c0_i32_0 = arith.constant 0 : i32
    %c0_i32_1 = arith.constant 0 : i32
    return %arg0, %c0_i32, %arg1, %c0_i32_0 : i32, i32, i32, i32
  }
  func.func @transform_6(%arg0: i32, %arg1: i32) -> (i32, i32, i32, i32) {
    %c0_i32 = arith.constant 0 : i32
    %c0_i32_0 = arith.constant 0 : i32
    %c0_i32_1 = arith.constant 0 : i32
    return %arg0, %c0_i32, %arg1, %c0_i32_0 : i32, i32, i32, i32
  }
  func.func @transform_7(%arg0: i32, %arg1: i32) -> (i32, i32, i32, i32) {
    %c0_i32 = arith.constant 0 : i32
    %c0_i32_0 = arith.constant 0 : i32
    %c0_i32_1 = arith.constant 0 : i32
    return %arg0, %c0_i32, %arg1, %c0_i32_0 : i32, i32, i32, i32
  }
}

</mosaic_0001>

<bundles_post_ra>
// kernel: tpu_custom_call.1
= control target key start
LH: loop header
LB: loop body
LE: loop exit
PB: predicated region body
PF: predicated region fallthrough
CT: control target
= control target key end

     0   :  { %s1464_s24 = smov 0   ;;  %s1466_s25 = smov 0   ;;  %s2043_s0 = inlined_call_operand.vmem [shape: f32[2,64,32], index: 0, kind: input, shape index: {}]   ;;  %s2044_s1 = inlined_call_operand.vmem [shape: f32[1,32], index: 1, kind: input, shape index: {}]   ;;  %s2045_s2 = inlined_call_operand.vmem [shape: f32[1,32], index: 2, kind: input, shape index: {}]   ;;  %s2046_s3 = inlined_call_operand.vmem [shape: bf16[32,96], index: 3, kind: input, shape index: {}]   ;;  %s2047_s4 = inlined_call_operand.vmem [shape: f32[1,96], index: 4, kind: input, shape index: {}]   ;;  %s2048_s5 = inlined_call_operand.vmem [shape: bf16[2,4,64,8], index: 5, kind: output, shape index: {0}]   ;;  %s2049_s6 = inlined_call_operand.vmem [shape: bf16[2,4,64,8], index: 6, kind: output, shape index: {1}]   ;;  %s2050_s7 = inlined_call_operand.vmem [shape: bf16[2,4,64,8], index: 7, kind: output, shape index: {2}]  }
   0x1   :  { %s1468_s26 = smov 0  }
   0x2 LB: > { %s30_s27 = sadd.s32 1, %s1406_s25  ;;  %p1224_p0 = scmp.ge.s32.totalorder %s1410_s26, 1  ;;  %s1410_s26 = sphi %s1468_s26, %s18_s26   ;;  %s1406_s25 = sphi %s1466_s25, %s2060_s25   ;;  %s1402_s24 = sphi %s1464_s24, %s2059_s24  }
   0x3   : > { %p32_p1 = scmp.ge.s32.totalorder %s30_s27, 2  ;;  %p267_p2 = scmp.lt.s32.totalorder %s1410_s26, 3 }
   0x5   : > { %s2062_s27 = smov (%p32_p1, %s30_s27), 0  ;;  %p268_p3 = pnand %p1224_p0, %p267_p2 }
   0x6   : > { %p326_p4 = scmp.lt.s32.totalorder (!%p268_p3), %s1402_s24, 1  ;;  %s1413_s23 = smov (!%p268_p3), 96  }
   0x7   : > { %271 = sbr.rel (%p268_p3) target bundleno = 766 (0x2fe), region = 40  ;;  %s1416_s29 = smov (!%p268_p3), 64  }
   0x8   : > { %s1417_s30 = smov (!%p268_p3), 112   ;;  %s1419_s9 = smov (!%p268_p3), 56  }
   0x9   : > { %s1420_s10 = smov (!%p268_p3), 104   ;;  %s1421_s11 = smov (!%p268_p3), 72  }
   0xa   : > { %s1422_s12 = smov (!%p268_p3), 48   ;;  %s1423_s13 = smov (!%p268_p3), 40  }
   0xc   : > { %s2064_s24 = smov (!%p326_p4, %s1402_s24), 1  ;;  %vm376_vm0 = vcmask 261120   ;;  %v1412_v16 = vmov 32.0  }
   0xd   : > { %s1319_s28 = sshll.u32 %s2064_s24, 6  ;;  %1370 = vrcp.f32 %v1412_v16  ;;  %s1650_s19 = sshll.u32 %s2064_s24, 7 }
   0xe   : > { %s333_s8 = scalar_lea.vmem %s2043_s0, %s1319_s28  ;;  %s1656_s22 = scalar_lea.vmem %s2048_s5, %s1650_s19 }
   0xf   : > { %v370_v0 = vld [vmem:[%s333_s8 + $0x20] sm:$0xff]  ;;  %v368_v1 = vld [vmem:[%s333_s8 + $0x10] sm:$0xff]  ;;  %v371_v6 = vld [vmem:[%s333_s8 + $0x28] sm:$0xff]  ;;  %s1414_s24 = smov 120   ;;  %s1415_s28 = smov 88  }
  0x10   : > { %v366_v2 = vld [vmem:[%s333_s8] sm:$0xff]  ;;  %v389_v3 = vsel %vm376_vm0, %v370_v0, 0.0  ;;  %v383_v4 = vsel %vm376_vm0, %v368_v1, 0.0  ;;  %v369_v7 = vld [vmem:[%s333_s8 + $0x18] sm:$0xff]  ;;  %v367_v8 = vld [vmem:[%s333_s8 + $0x8] sm:$0xff]  ;;  %v392_v9 = vsel %vm376_vm0, %v371_v6, 0.0  ;;  %s1748_s16 = scalar_lea.vmem %s2049_s6, %s1650_s19  ;;  %s1786_s20 = scalar_lea.vmem %s2050_s7, %s1650_s19 }
  0x11   : > { %v377_v5 = vsel %vm376_vm0, %v366_v2, 0.0  ;;  %390 = vadd.xlane.f32.xlu2 %v389_v3  ;;  %384 = vadd.xlane.f32.xlu1 %v383_v4  ;;  %v386_v10 = vsel %vm376_vm0, %v369_v7, 0.0  ;;  %v380_v11 = vsel %vm376_vm0, %v367_v8, 0.0  ;;  %v373_v12 = vld [vmem:[%s333_s8 + $0x38] sm:$0xff]  ;;  %v372_v13 = vld [vmem:[%s333_s8 + $0x30] sm:$0xff]  ;;  %v1324_v3 = vld [vmem:[%s2046_s3 + $0x8] sm:$0xff] }
  0x12   : > { %378 = vadd.xlane.f32.xlu0 %v377_v5  ;;  %v398_v14 = vsel %vm376_vm0, %v373_v12, 0.0  ;;  %v395_v15 = vsel %vm376_vm0, %v372_v13, 0.0  ;;  %624 = vmatpush.bf16.msra.mxu0 %v1324_v3  ;;  %s1418_s8 = smov 80  }
  0x13   : > { %v1371_v17 = vpop.eup %1370  ;;  %1325 = vmatpush.bf16.msra.mxu1 %v1324_v3  ;;  %1326 = vmatpush.bf16.msra.mxu2 %v1324_v3 }
  0x14   : > { %v402_v18 = vmul.f32 32.0, %v1371_v17  ;;  %vm406_vm1 = vweird.f32 %v1371_v17  ;;  %1327 = vmatpush.bf16.msra.mxu3 %v1324_v3 }
  0x16   : > { %v403_v19 = vsub.f32 1.0, %v402_v18 }
  0x18   : > { %v404_v20 = vmul.f32 %v1371_v17, %v403_v19 }
  0x19   : > { %393 = vadd.xlane.f32.xlu2 %v392_v9  ;;  %387 = vadd.xlane.f32.xlu1 %v386_v10 }
  0x1a   : > { %381 = vadd.xlane.f32.xlu0 %v380_v11  ;;  %v405_v21 = vadd.f32 %v1371_v17, %v404_v20 }
  0x1c   : > { %v1496_v22 = vsel %vm406_vm1, %v1371_v17, %v405_v21 }
  0x21   : > { %399 = vadd.xlane.f32.xlu1 %v398_v14 }
  0x22   : > { %396 = vadd.xlane.f32.xlu0 %v395_v15 }
  0x84   : > { %v391_v23 = vpop.xlane.xlu2 %390  ;;  %v385_v24 = vpop.xlane.xlu1 %384 }
  0x85   : > { %v410_v25 = vmul.f32 %v1496_v22, %v385_v24  ;;  %v379_v26 = vpop.xlane.xlu0 %378  ;;  %v412_v39 = vmul.f32 %v1496_v22, %v391_v23 }
  0x86   : > { %v408_v27 = vmul.f32 %v1496_v22, %v379_v26 }
  0x87   : > { %v1500_v28 = vsub.f32 %v368_v1, %v410_v25  ;;  %v1524_v46 = vsub.f32 %v370_v0, %v412_v39 }
  0x88   : > { %v1502_v29 = vsub.f32 %v366_v2, %v408_v27 }
  0x89   : > { %v426_v30 = vmul.f32 %v1500_v28, %v1500_v28  ;;  %v428_v55 = vmul.f32 %v1524_v46, %v1524_v46 }
  0x8a   : > { %v424_v31 = vmul.f32 %v1502_v29, %v1502_v29 }
  0x8b   : > { %v438_v32 = vsel %vm376_vm0, %v426_v30, 0.0  ;;  %v444_v58 = vsel %vm376_vm0, %v428_v55, 0.0 }
  0x8c   : > { %v394_v33 = vpop.xlane.xlu2 %393  ;;  %439 = vadd.xlane.f32.xlu1 %v438_v32  ;;  %v388_v34 = vpop.xlane.xlu1 %387  ;;  %v432_v35 = vsel %vm376_vm0, %v424_v31, 0.0 }
  0x8d   : > { %v413_v36 = vmul.f32 %v1496_v22, %v394_v33  ;;  %v411_v37 = vmul.f32 %v1496_v22, %v388_v34  ;;  %433 = vadd.xlane.f32.xlu2 %v432_v35  ;;  %v382_v38 = vpop.xlane.xlu0 %381 }
  0x8e   : > { %v409_v40 = vmul.f32 %v1496_v22, %v382_v38 }
  0x8f   : > { %v1514_v41 = vsub.f32 %v371_v6, %v413_v36  ;;  %v1516_v42 = vsub.f32 %v369_v7, %v411_v37  ;;  %v1323_v6 = vld [vmem:[%s2046_s3] sm:$0xff] }
  0x90   : > { %v1518_v43 = vsub.f32 %v367_v8, %v409_v40  ;;  %625 = vmatpush.bf16.msra.mxu0 %v1323_v6  ;;  %1328 = vmatpush.bf16.msra.mxu1 %v1323_v6 }
  0x91   : > { %v429_v44 = vmul.f32 %v1514_v41, %v1514_v41  ;;  %v427_v45 = vmul.f32 %v1516_v42, %v1516_v42  ;;  %1329 = vmatpush.bf16.msra.mxu2 %v1323_v6  ;;  %1330 = vmatpush.bf16.msra.mxu3 %v1323_v6 }
  0x92   : > { %v425_v47 = vmul.f32 %v1518_v43, %v1518_v43 }
  0x93   : > { %v447_v48 = vsel %vm376_vm0, %v429_v44, 0.0  ;;  %v441_v49 = vsel %vm376_vm0, %v427_v45, 0.0 }
  0x94   : > { %448 = vadd.xlane.f32.xlu1 %v447_v48  ;;  %v435_v50 = vsel %vm376_vm0, %v425_v47, 0.0  ;;  %v400_v51 = vpop.xlane.xlu1 %399 }
  0x95   : > { %442 = vadd.xlane.f32.xlu2 %v441_v49  ;;  %436 = vadd.xlane.f32.xlu0 %v435_v50  ;;  %v397_v52 = vpop.xlane.xlu0 %396  ;;  %v415_v54 = vmul.f32 %v1496_v22, %v400_v51 }
  0x96   : > { %v414_v53 = vmul.f32 %v1496_v22, %v397_v52 }
  0x97   : > { %v1537_v57 = vsub.f32 %v373_v12, %v415_v54 }
  0x98   : > { %v1535_v56 = vsub.f32 %v372_v13, %v414_v53 }
  0x99   : > { %v431_v61 = vmul.f32 %v1537_v57, %v1537_v57 }
  0x9a   : > { %v430_v59 = vmul.f32 %v1535_v56, %v1535_v56 }
  0x9b   : > { %v453_v62 = vsel %vm376_vm0, %v431_v61, 0.0 }
  0x9c   : > { %v450_v60 = vsel %vm376_vm0, %v430_v59, 0.0 }
  0x9d   : > { %445 = vadd.xlane.f32.xlu0 %v444_v58  ;;  %451 = vadd.xlane.f32.xlu2 %v450_v60 }
  0xa5   : > { %454 = vadd.xlane.f32.xlu0 %v453_v62 }
  0xff   : > { %v440_v63 = vpop.xlane.xlu1 %439 }
 0x100   : > { %v458_v0 = vmul.f32 %v440_v63, %v1496_v22  ;;  %v434_v1 = vpop.xlane.xlu2 %433 }
 0x101   : > { %v456_v2 = vmul.f32 %v434_v1, %v1496_v22 }
 0x102   : > { %v466_v4 = vadd.f32 1e-05, %v458_v0 }
 0x103   : > { %v464_v5 = vadd.f32 1e-05, %v456_v2 }
 0x104   : > { %1372 = vrsqrt.f32 %v466_v4  ;;  %vm498_vm4 = vweird.f32 %v466_v4 }
 0x105   : > { %1374 = vrsqrt.f32 %v464_v5  ;;  %vm478_vm6 = vweird.f32 %v464_v5 }
 0x107   : > { %v449_v7 = vpop.xlane.xlu1 %448 }
 0x108   : > { %v461_v8 = vmul.f32 %v449_v7, %v1496_v22  ;;  %v443_v9 = vpop.xlane.xlu2 %442  ;;  %v437_v10 = vpop.xlane.xlu0 %436 }
 0x109   : > { %v459_v11 = vmul.f32 %v443_v9, %v1496_v22  ;;  %v457_v12 = vmul.f32 %v437_v10, %v1496_v22 }
 0x10a   : > { %v1373_v13 = vpop.eup %1372  ;;  %v1557_v14 = vadd.f32 1e-05, %v461_v8 }
 0x10b   : > { %v1375_v15 = vpop.eup %1374  ;;  %v493_v16 = vmul.f32 %v1373_v13, %v466_v4  ;;  %v467_v17 = vadd.f32 1e-05, %v459_v11  ;;  %v1559_v18 = vadd.f32 1e-05, %v457_v12  ;;  %vm499_vm2 = vweird.f32 %v1373_v13 }
 0x10c   : > { %v473_v19 = vmul.f32 %v1375_v15, %v464_v5  ;;  %1376 = vrsqrt.f32 %v1557_v14  ;;  %vm479_vm3 = vweird.f32 %v1375_v15  ;;  %vm1576_vm5 = vmor %vm498_vm4, %vm499_vm2  ;;  %vm528_vm8 = vweird.f32 %v1557_v14 }
 0x10d   : > { %v494_v20 = vmul.f32 %v1373_v13, %v493_v16  ;;  %1378 = vrsqrt.f32 %v467_v17  ;;  %vm1580_vm7 = vmor %vm478_vm6, %vm479_vm3  ;;  %vm508_vm10 = vweird.f32 %v467_v17  ;;  %vm488_vm14 = vweird.f32 %v1559_v18  ;;  %v1368_v16 = vld [vmem:[%s2045_s2] ss:$0 sm:$0xff] }
 0x10e   : > { %v474_v21 = vmul.f32 %v1375_v15, %v473_v19  ;;  %1380 = vrsqrt.f32 %v1559_v18 }
 0x10f   : > { %v495_v23 = vmul.f32 0.5, %v494_v20 }
 0x110   : > { %v475_v24 = vmul.f32 0.5, %v474_v21  ;;  %v452_v25 = vpop.xlane.xlu2 %451  ;;  %v446_v26 = vpop.xlane.xlu0 %445 }
 0x111   : > { %v496_v27 = vsub.f32 1.5, %v495_v23  ;;  %v462_v30 = vmul.f32 %v452_v25, %v1496_v22  ;;  %v460_v31 = vmul.f32 %v446_v26, %v1496_v22 }
 0x112   : > { %v1565_v32 = vpop.eup %1376  ;;  %v476_v33 = vsub.f32 1.5, %v475_v24 }
 0x113   : > { %v1379_v34 = vpop.eup %1378  ;;  %v523_v35 = vmul.f32 %v1565_v32, %v1557_v14  ;;  %v1569_v36 = vadd.f32 1e-05, %v462_v30  ;;  %v1571_v39 = vadd.f32 1e-05, %v460_v31  ;;  %v497_v40 = vmul.f32 %v1373_v13, %v496_v27 }
 0x114   : > { %v1381_v37 = vpop.eup %1380  ;;  %v503_v38 = vmul.f32 %v1379_v34, %v467_v17  ;;  %v477_v44 = vmul.f32 %v1375_v15, %v476_v33  ;;  %vm509_vm9 = vweird.f32 %v1379_v34  ;;  %vm529_vm12 = vweird.f32 %v1565_v32 }
 0x115   : > { %v524_v45 = vmul.f32 %v1565_v32, %v523_v35  ;;  %v483_v47 = vmul.f32 %v1381_v37, %v1559_v18  ;;  %1382 = vrsqrt.f32 %v1569_v36  ;;  %v501_v55 = vsel %vm1576_vm5, %v1373_v13, %v497_v40  ;;  %vm510_vm13 = vmor %vm508_vm10, %vm509_vm9 }
 0x116   : > { %v504_v48 = vmul.f32 %v1379_v34, %v503_v38  ;;  %1384 = vrsqrt.f32 %v1571_v39  ;;  %v481_v58 = vsel %vm1580_vm7, %v1375_v15, %v477_v44  ;;  %vm489_vm11 = vweird.f32 %v1381_v37  ;;  %vm1605_vm1 = vmor %vm528_vm8, %vm529_vm12 }
 0x117   : > { %v525_v50 = vmul.f32 0.5, %v524_v45  ;;  %v484_v51 = vmul.f32 %v1381_v37, %v483_v47  ;;  %v554_v2 = vmul.f32 %v501_v55, %v1500_v28  ;;  %v552_v3 = vmul.f32 %v481_v58, %v1502_v29  ;;  %vm490_vm15 = vmor %vm488_vm14, %vm489_vm11 }
 0x118   : > { %v505_v53 = vmul.f32 0.5, %v504_v48  ;;  %v455_v54 = vpop.xlane.xlu0 %454  ;;  %vm538_vm2 = vweird.f32 %v1569_v36  ;;  %vm518_vm4 = vweird.f32 %v1571_v39  ;;  %vm655_vm11 = vcmask 60416  }
 0x119   : > { %v485_v59 = vmul.f32 0.5, %v484_v51  ;;  %v463_v60 = vmul.f32 %v455_v54, %v1496_v22  ;;  %v526_v61 = vsub.f32 1.5, %v525_v50  ;;  %v1597_v22 = vld [vmem:[%s2044_s1] ss:$0 sm:$0xff] }
 0x11a   : > { %v506_v62 = vsub.f32 1.5, %v505_v53  ;;  %v563_v15 = vmul.f32 %v1597_v22, %v552_v3  ;;  %v565_v14 = vmul.f32 %v1597_v22, %v554_v2 }
 0x11b   : > { %v486_v63 = vsub.f32 1.5, %v485_v59  ;;  %v471_v0 = vadd.f32 1e-05, %v463_v60  ;;  %v1383_v1 = vpop.eup %1382  ;;  %v527_v8 = vmul.f32 %v1565_v32, %v526_v61  ;;  %v1369_v61 = vld [vmem:[%s2047_s4] ss:$0 sm:$0xff] }
 0x11c   : > { %v507_v4 = vmul.f32 %v1379_v34, %v506_v62  ;;  %v533_v6 = vmul.f32 %v1383_v1, %v1569_v36  ;;  %v1385_v7 = vpop.eup %1384  ;;  %vm539_vm3 = vweird.f32 %v1383_v1  ;;  %v574_v25 = vadd.f32 %v1368_v16, %v563_v15 }
 0x11d   : > { %v487_v5 = vmul.f32 %v1381_v37, %v486_v63  ;;  %1386 = vrsqrt.f32 %v471_v0  ;;  %v513_v12 = vmul.f32 %v1385_v7, %v1571_v39  ;;  %v531_v19 = vsel %vm1605_vm1, %v1565_v32, %v527_v8  ;;  %vm1626_vm6 = vmor %vm538_vm2, %vm539_vm3 }
 0x11e   : > { %v511_v28 = vsel %vm510_vm13, %v1379_v34, %v507_v4  ;;  %v534_v11 = vmul.f32 %v1383_v1, %v533_v6  ;;  %vm519_vm5 = vweird.f32 %v1385_v7  ;;  %v576_v27 = vadd.f32 %v1368_v16, %v565_v14 }
 0x11f   : > { %v555_v9 = vmul.f32 %v511_v28, %v1516_v42  ;;  %v491_v10 = vsel %vm490_vm15, %v1381_v37, %v487_v5  ;;  %v514_v18 = vmul.f32 %v1385_v7, %v513_v12  ;;  %v557_v34 = vmul.f32 %v531_v19, %v1514_v41  ;;  %vm520_vm7 = vmor %vm518_vm4, %vm519_vm5 }
 0x120   : > { %v553_v13 = vmul.f32 %v491_v10, %v1518_v43  ;;  %v535_v17 = vmul.f32 0.5, %v534_v11  ;;  %vm548_vm8 = vweird.f32 %v471_v0 }
 0x121   : > { %v566_v42 = vmul.f32 %v1597_v22, %v555_v9  ;;  %v515_v21 = vmul.f32 0.5, %v514_v18  ;;  %v568_v39 = vmul.f32 %v1597_v22, %v557_v34 }
 0x122   : > { %v564_v43 = vmul.f32 %v1597_v22, %v553_v13  ;;  %v536_v20 = vsub.f32 1.5, %v535_v17 }
 0x123   : > { %v577_v23 = vadd.f32 %v1368_v16, %v566_v42  ;;  %v1387_v24 = vpop.eup %1386  ;;  %v516_v32 = vsub.f32 1.5, %v515_v21  ;;  %v579_v52 = vadd.f32 %v1368_v16, %v568_v39 }
 0x124   : > { %v575_v26 = vadd.f32 %v1368_v16, %v564_v43  ;;  %v537_v30 = vmul.f32 %v1383_v1, %v536_v20  ;;  %v543_v33 = vmul.f32 %v1387_v24, %v471_v0  ;;  %vm549_vm9 = vweird.f32 %v1387_v24 }
 0x125   : > { %v583_v37 = vpack.c.bf16 %v577_v23, %v576_v27  ;;  %v517_v38 = vmul.f32 %v1385_v7, %v516_v32  ;;  %vm550_vm10 = vmor %vm548_vm8, %vm549_vm9 }
 0x126   : > { %v582_v35 = vpack.c.bf16 %v575_v26, %v574_v25  ;;  %v544_v40 = vmul.f32 %v1387_v24, %v543_v33  ;;  %v541_v36 = vsel %vm1626_vm6, %v1383_v1, %v537_v30 }
 0x127   : > { %1242 = vmatmul.msk.bf16.vlgmr.msra.gmra.mxu1 %vm376_vm0, %v583_v37  ;;  %v521_v44 = vsel %vm520_vm7, %v1385_v7, %v517_v38  ;;  %v558_v48 = vmul.f32 %v541_v36, %v1535_v56 }
 0x128   : > { %1241 = vmatmul.msk.bf16.vlgmr.msra.gmra.mxu0 %vm376_vm0, %v582_v35  ;;  %v545_v45 = vmul.f32 0.5, %v544_v40  ;;  %v556_v41 = vmul.f32 %v521_v44, %v1524_v46 }
 0x129   : > { %v569_v58 = vmul.f32 %v1597_v22, %v558_v48 }
 0x12a   : > { %v546_v47 = vsub.f32 1.5, %v545_v45  ;;  %v567_v49 = vmul.f32 %v1597_v22, %v556_v41 }
 0x12b   : > { %v580_v59 = vadd.f32 %v1368_v16, %v569_v58 }
 0x12c   : > { %v547_v50 = vmul.f32 %v1387_v24, %v546_v47  ;;  %v578_v51 = vadd.f32 %v1368_v16, %v567_v49 }
 0x12e   : > { %v551_v53 = vsel %vm550_vm10, %v1387_v24, %v547_v50  ;;  %v584_v55 = vpack.c.bf16 %v579_v52, %v578_v51 }
 0x12f   : > { %v559_v54 = vmul.f32 %v551_v53, %v1537_v57 }
 0x130   : > { %1243 = vmatmul.msk.bf16.vlgmr.msra.gmra.mxu2 %vm376_vm0, %v584_v55 }
 0x131   : > { %v570_v46 = vmul.f32 %v1597_v22, %v559_v54 }
 0x133   : > { %v581_v60 = vadd.f32 %v1368_v16, %v570_v46 }
 0x135   : > { %v585_v56 = vpack.c.bf16 %v581_v60, %v580_v59 }
 0x137   : > { %1244 = vmatmul.msk.bf16.vlgmr.msra.gmra.mxu3 %vm376_vm0, %v585_v56 }
 0x1a4   : > { %v632_v62 = vpop.f32.mrf.mxu1 }
 0x1a5   : > { %v627_v57 = vpop.f32.mrf.mxu0  ;;  %v633_v0 = vadd.f32 %v1369_v61, %v632_v62 }
 0x1a6   : > { %v628_v63 = vadd.f32 %v1369_v61, %v627_v57 }
 0x1a7   : > { %v649_v2 = vpack.c.bf16 %v633_v0, %v633_v0 }
 0x1a8   : > { %v647_v1 = vpack.c.bf16 %v628_v63, %v628_v63 }
 0x1a9   : > { %676 = vrot.lane.b32.xlu0 %v649_v2, %s1413_s23  ;;  %740 = vrot.lane.b32.xlu2 %v649_v2, %s1414_s24  ;;  %658 = vst.msk [vmem:[%s1656_s22 + $0x8] sm:$0xf] %vm655_vm11, %v649_v2 }
 0x1aa   : > { %656 = vst.msk [vmem:[%s1656_s22] sm:$0xf] %vm655_vm11, %v647_v1  ;;  %672 = vrot.lane.b32.xlu1 %v647_v1, %s1413_s23 }
 0x1ac   : > { %v634_v4 = vpop.f32.mrf.mxu1 }
 0x1ad   : > { %v629_v3 = vpop.f32.mrf.mxu0  ;;  %v635_v5 = vadd.f32 %v1369_v61, %v634_v4 }
 0x1ae   : > { %v630_v22 = vadd.f32 %v1369_v61, %v629_v3 }
 0x1af   : > { %v1667_v7 = vpack.c.bf16 %v635_v5, %v635_v5 }
 0x1b0   : > { %v1665_v6 = vpack.c.bf16 %v630_v22, %v630_v22 }
 0x1b1   : > { %769 = vrot.lane.b32.xlu2 %v647_v1, %s1415_s28  ;;  %704 = vrot.lane.b32.xlu0 %v647_v1, %s1416_s29  ;;  %659 = vst.msk [vmem:[%s1656_s22 + $0xc] sm:$0xf] %vm655_vm11, %v1667_v7 }
 0x1b2   : > { %657 = vst.msk [vmem:[%s1656_s22 + $0x4] sm:$0xf] %vm655_vm11, %v1665_v6  ;;  %708 = vrot.lane.b32.xlu1 %v649_v2, %s1416_s29 }
 0x1b3   : > { %v637_v8 = vpop.f32.mrf.mxu2 }
 0x1b4   : > { %v638_v28 = vadd.f32 %v1369_v61, %v637_v8 }
 0x1b6   : > { %v1678_v29 = vpack.c.bf16 %v638_v28, %v638_v28 }
 0x1b8   : > { %660 = vst.msk [vmem:[%s1656_s22 + $0x10] sm:$0xf] %vm655_vm11, %v1678_v29 }
 0x1b9   : > { %839 = vrot.lane.b32.xlu2 %v649_v2, %s1417_s30  ;;  %773 = vrot.lane.b32.xlu0 %v649_v2, %s1415_s28 }
 0x1ba   : > { %736 = vrot.lane.b32.xlu1 %v647_v1, %s1414_s24  ;;  %v642_v9 = vpop.f32.mrf.mxu3 }
 0x1bb   : > { %v643_v10 = vadd.f32 %v1369_v61, %v642_v9  ;;  %v639_v11 = vpop.f32.mrf.mxu2 }
 0x1bc   : > { %v640_v12 = vadd.f32 %v1369_v61, %v639_v11 }
 0x1bd   : > { %v1686_v13 = vpack.c.bf16 %v643_v10, %v643_v10 }
 0x1be   : > { %v1688_v15 = vpack.c.bf16 %v640_v12, %v640_v12 }
 0x1bf   : > { %662 = vst.msk [vmem:[%s1656_s22 + $0x18] sm:$0xf] %vm655_vm11, %v1686_v13 }
 0x1c0   : > { %661 = vst.msk [vmem:[%s1656_s22 + $0x14] sm:$0xf] %vm655_vm11, %v1688_v15 }
 0x1c1   : > { %868 = vrot.lane.b32.xlu2 %v647_v1, %s1418_s8  ;;  %802 = vrot.lane.b32.xlu0 %v647_v1, %s1419_s9 }
 0x1c2   : > { %806 = vrot.lane.b32.xlu1 %v649_v2, %s1419_s9  ;;  %v644_v16 = vpop.f32.mrf.mxu3 }
 0x1c3   : > { %v645_v14 = vadd.f32 %v1369_v61, %v644_v16 }
 0x1c5   : > { %v1699_v17 = vpack.c.bf16 %v645_v14, %v645_v14 }
 0x1c7   : > { %663 = vst.msk [vmem:[%s1656_s22 + $0x1c] sm:$0xf] %vm655_vm11, %v1699_v17 }
 0x1c9   : > { %938 = vrot.lane.b32.xlu2 %v649_v2, %s1420_s10  ;;  %872 = vrot.lane.b32.xlu0 %v649_v2, %s1418_s8 }
 0x1ca   : > { %835 = vrot.lane.b32.xlu1 %v647_v1, %s1417_s30 }
 0x1d1   : > { %967 = vrot.lane.b32.xlu2 %v647_v1, %s1421_s11  ;;  %901 = vrot.lane.b32.xlu0 %v647_v1, %s1422_s12 }
 0x1d2   : > { %905 = vrot.lane.b32.xlu1 %v649_v2, %s1422_s12 }
 0x1d9   : > { %971 = vrot.lane.b32.xlu0 %v649_v2, %s1421_s11  ;;  %684 = vrot.lane.b32.xlu2 %v1686_v13, %s1413_s23 }
 0x1da   : > { %934 = vrot.lane.b32.xlu1 %v647_v1, %s1420_s10 }
 0x1e1   : > { %1000 = vrot.lane.b32.xlu0 %v647_v1, %s1423_s13  ;;  %712 = vrot.lane.b32.xlu2 %v1678_v29, %s1416_s29 }
 0x1e2   : > { %1004 = vrot.lane.b32.xlu1 %v649_v2, %s1423_s13 }
 0x1e9   : > { %716 = vrot.lane.b32.xlu0 %v1686_v13, %s1416_s29  ;;  %781 = vrot.lane.b32.xlu2 %v1686_v13, %s1415_s28 }
 0x1ea   : > { %680 = vrot.lane.b32.xlu1 %v1678_v29, %s1413_s23 }
 0x1f1   : > { %744 = vrot.lane.b32.xlu0 %v1678_v29, %s1414_s24  ;;  %810 = vrot.lane.b32.xlu2 %v1678_v29, %s1419_s9 }
 0x1f2   : > { %748 = vrot.lane.b32.xlu1 %v1686_v13, %s1414_s24 }
 0x1f9   : > { %814 = vrot.lane.b32.xlu0 %v1686_v13, %s1419_s9  ;;  %880 = vrot.lane.b32.xlu2 %v1686_v13, %s1418_s8 }
 0x1fa   : > { %777 = vrot.lane.b32.xlu1 %v1678_v29, %s1415_s28 }
 0x201   : > { %843 = vrot.lane.b32.xlu0 %v1678_v29, %s1417_s30  ;;  %909 = vrot.lane.b32.xlu2 %v1678_v29, %s1422_s12 }
 0x202   : > { %847 = vrot.lane.b32.xlu1 %v1686_v13, %s1417_s30 }
 0x203   : > { %v741_v18 = vpop.permute.xlu2 %740 }
 0x204   : > { %1247 = vst.msk [vmem:[%s1656_s22 + $0x28] sm:$0xf] %vm655_vm11, %v741_v18 }
 0x209   : > { %913 = vrot.lane.b32.xlu0 %v1686_v13, %s1422_s12  ;;  %979 = vrot.lane.b32.xlu2 %v1686_v13, %s1421_s11 }
 0x20a   : > { %876 = vrot.lane.b32.xlu1 %v1678_v29, %s1418_s8 }
 0x20b   : > { %v770_v42 = vpop.permute.xlu2 %769 }
 0x20c   : > { %1253 = vst.msk [vmem:[%s1748_s16 + $0x20] sm:$0xf] %vm655_vm11, %v770_v42 }
 0x211   : > { %942 = vrot.lane.b32.xlu0 %v1678_v29, %s1420_s10  ;;  %1008 = vrot.lane.b32.xlu2 %v1678_v29, %s1423_s13 }
 0x212   : > { %946 = vrot.lane.b32.xlu1 %v1686_v13, %s1420_s10 }
 0x213   : > { %v840_v19 = vpop.permute.xlu2 %839 }
 0x214   : > { %1271 = vst.msk [vmem:[%s1656_s22 + $0x48] sm:$0xf] %vm655_vm11, %v840_v19 }
 0x219   : > { %710 = vrot.lane.b32.xlu0 %v1667_v7, %s1416_s29  ;;  %674 = vrot.lane.b32.xlu2 %v1665_v6, %s1413_s23 }
 0x21a   : > { %975 = vrot.lane.b32.xlu1 %v1678_v29, %s1421_s11 }
 0x21b   : > { %v869_v43 = vpop.permute.xlu2 %868  ;;  %v677_v20 = vpop.permute.xlu0 %676 }
 0x21c   : > { %1277 = vst.msk [vmem:[%s1748_s16 + $0x40] sm:$0xf] %vm655_vm11, %v869_v43  ;;  %v673_v21 = vpop.permute.xlu1 %672 }
 0x21d   : > { %696 = vst.msk [vmem:[%s1748_s16] sm:$0xf] %vm655_vm11, %v673_v21 }
 0x21e   : > { %698 = vst.msk [vmem:[%s1748_s16 + $0x8] sm:$0xf] %vm655_vm11, %v677_v20 }
 0x221   : > { %738 = vrot.lane.b32.xlu0 %v1665_v6, %s1414_s24  ;;  %678 = vrot.lane.b32.xlu2 %v1667_v7, %s1413_s23 }
 0x222   : > { %742 = vrot.lane.b32.xlu1 %v1667_v7, %s1414_s24 }
 0x223   : > { %v939_v23 = vpop.permute.xlu2 %938  ;;  %v705_v24 = vpop.permute.xlu0 %704 }
 0x224   : > { %1295 = vst.msk [vmem:[%s1656_s22 + $0x68] sm:$0xf] %vm655_vm11, %v939_v23  ;;  %v709_v25 = vpop.permute.xlu1 %708 }
 0x225   : > { %730 = vst.msk [vmem:[%s1786_s20 + $0x8] sm:$0xf] %vm655_vm11, %v709_v25 }
 0x226   : > { %728 = vst.msk [vmem:[%s1786_s20] sm:$0xf] %vm655_vm11, %v705_v24 }
 0x229   : > { %808 = vrot.lane.b32.xlu0 %v1667_v7, %s1419_s9  ;;  %706 = vrot.lane.b32.xlu2 %v1665_v6, %s1416_s29 }
 0x22a   : > { %771 = vrot.lane.b32.xlu1 %v1665_v6, %s1415_s28 }
 0x22b   : > { %v968_v26 = vpop.permute.xlu2 %967  ;;  %v774_v27 = vpop.permute.xlu0 %773 }
 0x22c   : > { %1301 = vst.msk [vmem:[%s1748_s16 + $0x60] sm:$0xf] %vm655_vm11, %v968_v26  ;;  %v737_v30 = vpop.permute.xlu1 %736 }
 0x22d   : > { %1245 = vst.msk [vmem:[%s1656_s22 + $0x20] sm:$0xf] %vm655_vm11, %v737_v30 }
 0x22e   : > { %1255 = vst.msk [vmem:[%s1748_s16 + $0x28] sm:$0xf] %vm655_vm11, %v774_v27 }
 0x231   : > { %837 = vrot.lane.b32.xlu0 %v1665_v6, %s1417_s30  ;;  %775 = vrot.lane.b32.xlu2 %v1667_v7, %s1415_s28 }
 0x232   : > { %841 = vrot.lane.b32.xlu1 %v1667_v7, %s1417_s30 }
 0x233   : > { %v685_v31 = vpop.permute.xlu2 %684  ;;  %v803_v32 = vpop.permute.xlu0 %802 }
 0x234   : > { %v807_v33 = vpop.permute.xlu1 %806  ;;  %702 = vst.msk [vmem:[%s1748_s16 + $0x18] sm:$0xf] %vm655_vm11, %v685_v31 }
 0x235   : > { %1263 = vst.msk [vmem:[%s1786_s20 + $0x28] sm:$0xf] %vm655_vm11, %v807_v33 }
 0x236   : > { %1261 = vst.msk [vmem:[%s1786_s20 + $0x20] sm:$0xf] %vm655_vm11, %v803_v32 }
 0x239   : > { %907 = vrot.lane.b32.xlu0 %v1667_v7, %s1422_s12  ;;  %804 = vrot.lane.b32.xlu2 %v1665_v6, %s1419_s9 }
 0x23a   : > { %870 = vrot.lane.b32.xlu1 %v1665_v6, %s1418_s8 }
 0x23b   : > { %v713_v34 = vpop.permute.xlu2 %712  ;;  %v873_v35 = vpop.permute.xlu0 %872 }
 0x23c   : > { %v836_v37 = vpop.permute.xlu1 %835  ;;  %732 = vst.msk [vmem:[%s1786_s20 + $0x10] sm:$0xf] %vm655_vm11, %v713_v34 }
 0x23d   : > { %1269 = vst.msk [vmem:[%s1656_s22 + $0x40] sm:$0xf] %vm655_vm11, %v836_v37 }
 0x23e   : > { %1279 = vst.msk [vmem:[%s1748_s16 + $0x48] sm:$0xf] %vm655_vm11, %v873_v35 }
 0x241   : > { %936 = vrot.lane.b32.xlu0 %v1665_v6, %s1420_s10  ;;  %874 = vrot.lane.b32.xlu2 %v1667_v7, %s1418_s8 }
 0x242   : > { %940 = vrot.lane.b32.xlu1 %v1667_v7, %s1420_s10 }
 0x243   : > { %v782_v38 = vpop.permute.xlu2 %781  ;;  %v902_v40 = vpop.permute.xlu0 %901 }
 0x244   : > { %v906_v36 = vpop.permute.xlu1 %905  ;;  %1259 = vst.msk [vmem:[%s1748_s16 + $0x38] sm:$0xf] %vm655_vm11, %v782_v38 }
 0x245   : > { %1287 = vst.msk [vmem:[%s1786_s20 + $0x48] sm:$0xf] %vm655_vm11, %v906_v36 }
 0x246   : > { %1285 = vst.msk [vmem:[%s1786_s20 + $0x40] sm:$0xf] %vm655_vm11, %v902_v40 }
 0x249   : > { %1006 = vrot.lane.b32.xlu0 %v1667_v7, %s1423_s13  ;;  %903 = vrot.lane.b32.xlu2 %v1665_v6, %s1422_s12 }
 0x24a   : > { %969 = vrot.lane.b32.xlu1 %v1665_v6, %s1421_s11 }
 0x24b   : > { %v811_v44 = vpop.permute.xlu2 %810  ;;  %v972_v45 = vpop.permute.xlu0 %971 }
 0x24c   : > { %v935_v41 = vpop.permute.xlu1 %934  ;;  %1265 = vst.msk [vmem:[%s1786_s20 + $0x30] sm:$0xf] %vm655_vm11, %v811_v44 }
 0x24d   : > { %1293 = vst.msk [vmem:[%s1656_s22 + $0x60] sm:$0xf] %vm655_vm11, %v935_v41 }
 0x24e   : > { %1303 = vst.msk [vmem:[%s1748_s16 + $0x68] sm:$0xf] %vm655_vm11, %v972_v45 }
 0x251   : > { %682 = vrot.lane.b32.xlu0 %v1688_v15, %s1413_s23  ;;  %973 = vrot.lane.b32.xlu2 %v1667_v7, %s1421_s11 }
 0x252   : > { %686 = vrot.lane.b32.xlu1 %v1699_v17, %s1413_s23 }
 0x253   : > { %v881_v39 = vpop.permute.xlu2 %880  ;;  %v1001_v47 = vpop.permute.xlu0 %1000 }
 0x254   : > { %v1005_v48 = vpop.permute.xlu1 %1004  ;;  %1283 = vst.msk [vmem:[%s1748_s16 + $0x58] sm:$0xf] %vm655_vm11, %v881_v39 }
 0x255   : > { %1311 = vst.msk [vmem:[%s1786_s20 + $0x68] sm:$0xf] %vm655_vm11, %v1005_v48 }
 0x256   : > { %1309 = vst.msk [vmem:[%s1786_s20 + $0x60] sm:$0xf] %vm655_vm11, %v1001_v47 }
 0x259   : > { %750 = vrot.lane.b32.xlu0 %v1699_v17, %s1414_s24  ;;  %1002 = vrot.lane.b32.xlu2 %v1665_v6, %s1423_s13 }
 0x25a   : > { %714 = vrot.lane.b32.xlu1 %v1688_v15, %s1416_s29 }
 0x25b   : > { %v910_v49 = vpop.permute.xlu2 %909  ;;  %v717_v50 = vpop.permute.xlu0 %716 }
 0x25c   : > { %v681_v51 = vpop.permute.xlu1 %680  ;;  %1289 = vst.msk [vmem:[%s1786_s20 + $0x50] sm:$0xf] %vm655_vm11, %v910_v49 }
 0x25d   : > { %700 = vst.msk [vmem:[%s1748_s16 + $0x10] sm:$0xf] %vm655_vm11, %v681_v51 }
 0x25e   : > { %734 = vst.msk [vmem:[%s1786_s20 + $0x18] sm:$0xf] %vm655_vm11, %v717_v50 }
 0x261   : > { %779 = vrot.lane.b32.xlu0 %v1688_v15, %s1415_s28  ;;  %718 = vrot.lane.b32.xlu2 %v1699_v17, %s1416_s29 }
 0x262   : > { %783 = vrot.lane.b32.xlu1 %v1699_v17, %s1415_s28 }
 0x263   : > { %v980_v52 = vpop.permute.xlu2 %979  ;;  %v745_v53 = vpop.permute.xlu0 %744 }
 0x264   : > { %v749_v54 = vpop.permute.xlu1 %748  ;;  %1307 = vst.msk [vmem:[%s1748_s16 + $0x78] sm:$0xf] %vm655_vm11, %v980_v52 }
 0x265   : > { %1251 = vst.msk [vmem:[%s1656_s22 + $0x38] sm:$0xf] %vm655_vm11, %v749_v54 }
 0x266   : > { %1249 = vst.msk [vmem:[%s1656_s22 + $0x30] sm:$0xf] %vm655_vm11, %v745_v53 }
 0x269   : > { %849 = vrot.lane.b32.xlu0 %v1699_v17, %s1417_s30  ;;  %746 = vrot.lane.b32.xlu2 %v1688_v15, %s1414_s24 }
 0x26a   : > { %812 = vrot.lane.b32.xlu1 %v1688_v15, %s1419_s9 }
 0x26b   : > { %v1009_v55 = vpop.permute.xlu2 %1008  ;;  %v815_v58 = vpop.permute.xlu0 %814 }
 0x26c   : > { %v778_v46 = vpop.permute.xlu1 %777  ;;  %1313 = vst.msk [vmem:[%s1786_s20 + $0x70] sm:$0xf] %vm655_vm11, %v1009_v55 }
 0x26d   : > { %1257 = vst.msk [vmem:[%s1748_s16 + $0x30] sm:$0xf] %vm655_vm11, %v778_v46 }
 0x26e   : > { %1267 = vst.msk [vmem:[%s1786_s20 + $0x38] sm:$0xf] %vm655_vm11, %v815_v58 }
 0x271   : > { %878 = vrot.lane.b32.xlu0 %v1688_v15, %s1418_s8  ;;  %816 = vrot.lane.b32.xlu2 %v1699_v17, %s1419_s9 }
 0x272   : > { %882 = vrot.lane.b32.xlu1 %v1699_v17, %s1418_s8 }
 0x273   : > { %v675_v59 = vpop.permute.xlu2 %674  ;;  %v844_v60 = vpop.permute.xlu0 %843 }
 0x274   : > { %v848_v56 = vpop.permute.xlu1 %847  ;;  %697 = vst.msk [vmem:[%s1748_s16 + $0x4] sm:$0xf] %vm655_vm11, %v675_v59 }
 0x275   : > { %1275 = vst.msk [vmem:[%s1656_s22 + $0x58] sm:$0xf] %vm655_vm11, %v848_v56 }
 0x276   : > { %1273 = vst.msk [vmem:[%s1656_s22 + $0x50] sm:$0xf] %vm655_vm11, %v844_v60 }
 0x279   : > { %948 = vrot.lane.b32.xlu0 %v1699_v17, %s1420_s10  ;;  %845 = vrot.lane.b32.xlu2 %v1688_v15, %s1417_s30 }
 0x27a   : > { %911 = vrot.lane.b32.xlu1 %v1688_v15, %s1422_s12 }
 0x27b   : > { %v679_v61 = vpop.permute.xlu2 %678  ;;  %v914_v57 = vpop.permute.xlu0 %913 }
 0x27c   : > { %v877_v62 = vpop.permute.xlu1 %876  ;;  %699 = vst.msk [vmem:[%s1748_s16 + $0xc] sm:$0xf] %vm655_vm11, %v679_v61 }
 0x27d   : > { %1281 = vst.msk [vmem:[%s1748_s16 + $0x50] sm:$0xf] %vm655_vm11, %v877_v62 }
 0x27e   : > { %1291 = vst.msk [vmem:[%s1786_s20 + $0x58] sm:$0xf] %vm655_vm11, %v914_v57 }
 0x281   : > { %977 = vrot.lane.b32.xlu0 %v1688_v15, %s1421_s11  ;;  %915 = vrot.lane.b32.xlu2 %v1699_v17, %s1422_s12 }
 0x282   : > { %981 = vrot.lane.b32.xlu1 %v1699_v17, %s1421_s11 }
 0x283   : > { %v707_v63 = vpop.permute.xlu2 %706  ;;  %v943_v0 = vpop.permute.xlu0 %942 }
 0x284   : > { %v947_v1 = vpop.permute.xlu1 %946  ;;  %729 = vst.msk [vmem:[%s1786_s20 + $0x4] sm:$0xf] %vm655_vm11, %v707_v63 }
 0x285   : > { %1299 = vst.msk [vmem:[%s1656_s22 + $0x78] sm:$0xf] %vm655_vm11, %v947_v1 }
 0x286   : > { %1297 = vst.msk [vmem:[%s1656_s22 + $0x70] sm:$0xf] %vm655_vm11, %v943_v0 }
 0x289   : > { %1012 = vrot.lane.b32.xlu0 %v1686_v13, %s1423_s13  ;;  %944 = vrot.lane.b32.xlu2 %v1688_v15, %s1420_s10 }
 0x28a   : > { %1010 = vrot.lane.b32.xlu1 %v1688_v15, %s1423_s13 }
 0x28b   : > { %v776_v2 = vpop.permute.xlu2 %775  ;;  %v711_v3 = vpop.permute.xlu0 %710 }
 0x28c   : > { %v976_v4 = vpop.permute.xlu1 %975  ;;  %1256 = vst.msk [vmem:[%s1748_s16 + $0x2c] sm:$0xf] %vm655_vm11, %v776_v2 }
 0x28d   : > { %1305 = vst.msk [vmem:[%s1748_s16 + $0x70] sm:$0xf] %vm655_vm11, %v976_v4 }
 0x28e   : > { %731 = vst.msk [vmem:[%s1786_s20 + $0xc] sm:$0xf] %vm655_vm11, %v711_v3 }
 0x291   : > { %1014 = vrot.lane.b32.xlu2 %v1699_v17, %s1423_s13 }
 0x293   : > { %v805_v22 = vpop.permute.xlu2 %804  ;;  %v739_v5 = vpop.permute.xlu0 %738 }
 0x294   : > { %v743_v6 = vpop.permute.xlu1 %742  ;;  %1262 = vst.msk [vmem:[%s1786_s20 + $0x24] sm:$0xf] %vm655_vm11, %v805_v22 }
 0x295   : > { %1248 = vst.msk [vmem:[%s1656_s22 + $0x2c] sm:$0xf] %vm655_vm11, %v743_v6 }
 0x296   : > { %1246 = vst.msk [vmem:[%s1656_s22 + $0x24] sm:$0xf] %vm655_vm11, %v739_v5 }
 0x29b   : > { %v875_v7 = vpop.permute.xlu2 %874  ;;  %v809_v8 = vpop.permute.xlu0 %808 }
 0x29c   : > { %v772_v28 = vpop.permute.xlu1 %771  ;;  %1280 = vst.msk [vmem:[%s1748_s16 + $0x4c] sm:$0xf] %vm655_vm11, %v875_v7 }
 0x29d   : > { %1254 = vst.msk [vmem:[%s1748_s16 + $0x24] sm:$0xf] %vm655_vm11, %v772_v28 }
 0x29e   : > { %1264 = vst.msk [vmem:[%s1786_s20 + $0x2c] sm:$0xf] %vm655_vm11, %v809_v8 }
 0x2a3   : > { %v904_v29 = vpop.permute.xlu2 %903  ;;  %v838_v9 = vpop.permute.xlu0 %837 }
 0x2a4   : > { %v842_v10 = vpop.permute.xlu1 %841  ;;  %1286 = vst.msk [vmem:[%s1786_s20 + $0x44] sm:$0xf] %vm655_vm11, %v904_v29 }
 0x2a5   : > { %1272 = vst.msk [vmem:[%s1656_s22 + $0x4c] sm:$0xf] %vm655_vm11, %v842_v10 }
 0x2a6   : > { %1270 = vst.msk [vmem:[%s1656_s22 + $0x44] sm:$0xf] %vm655_vm11, %v838_v9 }
 0x2ab   : > { %v974_v11 = vpop.permute.xlu2 %973  ;;  %v908_v12 = vpop.permute.xlu0 %907 }
 0x2ac   : > { %v871_v13 = vpop.permute.xlu1 %870  ;;  %1304 = vst.msk [vmem:[%s1748_s16 + $0x6c] sm:$0xf] %vm655_vm11, %v974_v11 }
 0x2ad   : > { %1278 = vst.msk [vmem:[%s1748_s16 + $0x44] sm:$0xf] %vm655_vm11, %v871_v13 }
 0x2ae   : > { %1288 = vst.msk [vmem:[%s1786_s20 + $0x4c] sm:$0xf] %vm655_vm11, %v908_v12 }
 0x2b3   : > { %v1003_v15 = vpop.permute.xlu2 %1002  ;;  %v937_v16 = vpop.permute.xlu0 %936 }
 0x2b4   : > { %v941_v14 = vpop.permute.xlu1 %940  ;;  %1310 = vst.msk [vmem:[%s1786_s20 + $0x64] sm:$0xf] %vm655_vm11, %v1003_v15 }
 0x2b5   : > { %1296 = vst.msk [vmem:[%s1656_s22 + $0x6c] sm:$0xf] %vm655_vm11, %v941_v14 }
 0x2b6   : > { %1294 = vst.msk [vmem:[%s1656_s22 + $0x64] sm:$0xf] %vm655_vm11, %v937_v16 }
 0x2bb   : > { %v719_v17 = vpop.permute.xlu2 %718  ;;  %v1007_v18 = vpop.permute.xlu0 %1006 }
 0x2bc   : > { %v970_v42 = vpop.permute.xlu1 %969  ;;  %735 = vst.msk [vmem:[%s1786_s20 + $0x1c] sm:$0xf] %vm655_vm11, %v719_v17 }
 0x2bd   : > { %1302 = vst.msk [vmem:[%s1748_s16 + $0x64] sm:$0xf] %vm655_vm11, %v970_v42 }
 0x2be   : > { %1312 = vst.msk [vmem:[%s1786_s20 + $0x6c] sm:$0xf] %vm655_vm11, %v1007_v18 }
 0x2c3   : > { %v747_v19 = vpop.permute.xlu2 %746  ;;  %v683_v43 = vpop.permute.xlu0 %682 }
 0x2c4   : > { %v687_v20 = vpop.permute.xlu1 %686  ;;  %1250 = vst.msk [vmem:[%s1656_s22 + $0x34] sm:$0xf] %vm655_vm11, %v747_v19 }
 0x2c5   : > { %703 = vst.msk [vmem:[%s1748_s16 + $0x1c] sm:$0xf] %vm655_vm11, %v687_v20 }
 0x2c6   : > { %701 = vst.msk [vmem:[%s1748_s16 + $0x14] sm:$0xf] %vm655_vm11, %v683_v43 }
 0x2cb   : > { %v817_v21 = vpop.permute.xlu2 %816  ;;  %v751_v23 = vpop.permute.xlu0 %750 }
 0x2cc   : > { %v715_v24 = vpop.permute.xlu1 %714  ;;  %1268 = vst.msk [vmem:[%s1786_s20 + $0x3c] sm:$0xf] %vm655_vm11, %v817_v21 }
 0x2cd   : > { %733 = vst.msk [vmem:[%s1786_s20 + $0x14] sm:$0xf] %vm655_vm11, %v715_v24 }
 0x2ce   : > { %1252 = vst.msk [vmem:[%s1656_s22 + $0x3c] sm:$0xf] %vm655_vm11, %v751_v23 }
 0x2d3   : > { %v846_v25 = vpop.permute.xlu2 %845  ;;  %v780_v26 = vpop.permute.xlu0 %779 }
 0x2d4   : > { %v784_v27 = vpop.permute.xlu1 %783  ;;  %1274 = vst.msk [vmem:[%s1656_s22 + $0x54] sm:$0xf] %vm655_vm11, %v846_v25 }
 0x2d5   : > { %1260 = vst.msk [vmem:[%s1748_s16 + $0x3c] sm:$0xf] %vm655_vm11, %v784_v27 }
 0x2d6   : > { %1258 = vst.msk [vmem:[%s1748_s16 + $0x34] sm:$0xf] %vm655_vm11, %v780_v26 }
 0x2db   : > { %v916_v30 = vpop.permute.xlu2 %915  ;;  %v850_v31 = vpop.permute.xlu0 %849 }
 0x2dc   : > { %v813_v32 = vpop.permute.xlu1 %812  ;;  %1292 = vst.msk [vmem:[%s1786_s20 + $0x5c] sm:$0xf] %vm655_vm11, %v916_v30 }
 0x2dd   : > { %1266 = vst.msk [vmem:[%s1786_s20 + $0x34] sm:$0xf] %vm655_vm11, %v813_v32 }
 0x2de   : > { %1276 = vst.msk [vmem:[%s1656_s22 + $0x5c] sm:$0xf] %vm655_vm11, %v850_v31 }
 0x2e3   : > { %v945_v33 = vpop.permute.xlu2 %944  ;;  %v879_v34 = vpop.permute.xlu0 %878 }
 0x2e4   : > { %v883_v35 = vpop.permute.xlu1 %882  ;;  %1298 = vst.msk [vmem:[%s1656_s22 + $0x74] sm:$0xf] %vm655_vm11, %v945_v33 }
 0x2e5   : > { %1284 = vst.msk [vmem:[%s1748_s16 + $0x5c] sm:$0xf] %vm655_vm11, %v883_v35 }
 0x2e6   : > { %1282 = vst.msk [vmem:[%s1748_s16 + $0x54] sm:$0xf] %vm655_vm11, %v879_v34 }
 0x2eb   : > { %v1015_v37 = vpop.permute.xlu2 %1014  ;;  %v949_v38 = vpop.permute.xlu0 %948 }
 0x2ec   : > { %v912_v40 = vpop.permute.xlu1 %911  ;;  %1316 = vst.msk [vmem:[%s1786_s20 + $0x7c] sm:$0xf] %vm655_vm11, %v1015_v37 }
 0x2ed   : > { %1290 = vst.msk [vmem:[%s1786_s20 + $0x54] sm:$0xf] %vm655_vm11, %v912_v40 }
 0x2ee   : > { %1300 = vst.msk [vmem:[%s1656_s22 + $0x7c] sm:$0xf] %vm655_vm11, %v949_v38 }
 0x2f3   : > { %v978_v36 = vpop.permute.xlu0 %977 }
 0x2f4   : > { %v982_v44 = vpop.permute.xlu1 %981  ;;  %1306 = vst.msk [vmem:[%s1748_s16 + $0x74] sm:$0xf] %vm655_vm11, %v978_v36 }
 0x2f5   : > { %1308 = vst.msk [vmem:[%s1748_s16 + $0x7c] sm:$0xf] %vm655_vm11, %v982_v44 }
 0x2fb   : > { %v1013_v45 = vpop.permute.xlu0 %1012 }
 0x2fc   : > { %v1011_v41 = vpop.permute.xlu1 %1010  ;;  %1315 = vst.msk [vmem:[%s1786_s20 + $0x78] sm:$0xf] %vm655_vm11, %v1013_v45 }
 0x2fd   : > { %1314 = vst.msk [vmem:[%s1786_s20 + $0x74] sm:$0xf] %vm655_vm11, %v1011_v41 }
 0x2fe PF: > { %s18_s26 = sadd.s32 1, %s1410_s26   ;;  %s2059_s24 = smov %s1406_s25 }
 0x2ff   : > { %p15_p5 = scmp.ge.s32.totalorder %s18_s26, 4   ;;  %s2060_s25 = smov %s2062_s27 }
 0x301   :  { %17 = sbr.rel (!%p15_p5) target bundleno = 2 (0x2), region = 103 }

// kernel: tpu_custom_call.1
= control target key start
LH: loop header
LB: loop body
LE: loop exit
PB: predicated region body
PF: predicated region fallthrough
CT: control target
= control target key end

     0   :  { %s1464_s24 = smov 0   ;;  %s1466_s25 = smov 0   ;;  %s2043_s0 = inlined_call_operand.vmem [shape: f32[2,64,32], index: 0, kind: input, shape index: {}]   ;;  %s2044_s1 = inlined_call_operand.vmem [shape: f32[1,32], index: 1, kind: input, shape index: {}]   ;;  %s2045_s2 = inlined_call_operand.vmem [shape: f32[1,32], index: 2, kind: input, shape index: {}]   ;;  %s2046_s3 = inlined_call_operand.vmem [shape: bf16[32,96], index: 3, kind: input, shape index: {}]   ;;  %s2047_s4 = inlined_call_operand.vmem [shape: f32[1,96], index: 4, kind: input, shape index: {}]   ;;  %s2048_s5 = inlined_call_operand.vmem [shape: bf16[2,4,64,8], index: 5, kind: output, shape index: {0}]   ;;  %s2049_s6 = inlined_call_operand.vmem [shape: bf16[2,4,64,8], index: 6, kind: output, shape index: {1}]   ;;  %s2050_s7 = inlined_call_operand.vmem [shape: bf16[2,4,64,8], index: 7, kind: output, shape index: {2}]  }
   0x1   :  { %s1468_s26 = smov 0  }
   0x2 LB: > { %s30_s27 = sadd.s32 1, %s1406_s25  ;;  %p1224_p0 = scmp.ge.s32.totalorder %s1410_s26, 1  ;;  %s1410_s26 = sphi %s1468_s26, %s18_s26   ;;  %s1406_s25 = sphi %s1466_s25, %s2060_s25   ;;  %s1402_s24 = sphi %s1464_s24, %s2059_s24  }
   0x3   : > { %p32_p1 = scmp.ge.s32.totalorder %s30_s27, 2  ;;  %p267_p2 = scmp.lt.s32.totalorder %s1410_s26, 3 }
   0x5   : > { %s2062_s27 = smov (%p32_p1, %s30_s27), 0  ;;  %p268_p3 = pnand %p1224_p0, %p267_p2 }
   0x6   : > { %p326_p4 = scmp.lt.s32.totalorder (!%p268_p3), %s1402_s24, 1  ;;  %s1413_s23 = smov (!%p268_p3), 96  }
   0x7   : > { %271 = sbr.rel (%p268_p3) target bundleno = 766 (0x2fe), region = 40  ;;  %s1416_s29 = smov (!%p268_p3), 64  }
   0x8   : > { %s1417_s30 = smov (!%p268_p3), 112   ;;  %s1419_s9 = smov (!%p268_p3), 56  }
   0x9   : > { %s1420_s10 = smov (!%p268_p3), 104   ;;  %s1421_s11 = smov (!%p268_p3), 72  }
   0xa   : > { %s1422_s12 = smov (!%p268_p3), 48   ;;  %s1423_s13 = smov (!%p268_p3), 40  }
   0xc   : > { %s2064_s24 = smov (!%p326_p4, %s1402_s24), 1  ;;  %vm376_vm0 = vcmask 261120   ;;  %v1412_v16 = vmov 32.0  }
   0xd   : > { %s1319_s28 = sshll.u32 %s2064_s24, 6  ;;  %1370 = vrcp.f32 %v1412_v16  ;;  %s1650_s19 = sshll.u32 %s2064_s24, 7 }
   0xe   : > { %s333_s8 = scalar_lea.vmem %s2043_s0, %s1319_s28  ;;  %s1656_s22 = scalar_lea.vmem %s2048_s5, %s1650_s19 }
   0xf   : > { %v370_v0 = vld [vmem:[%s333_s8 + $0x20] sm:$0xff]  ;;  %v368_v1 = vld [vmem:[%s333_s8 + $0x10] sm:$0xff]  ;;  %v371_v6 = vld [vmem:[%s333_s8 + $0x28] sm:$0xff]  ;;  %s1414_s24 = smov 120   ;;  %s1415_s28 = smov 88  }
  0x10   : > { %v366_v2 = vld [vmem:[%s333_s8] sm:$0xff]  ;;  %v389_v3 = vsel %vm376_vm0, %v370_v0, 0.0  ;;  %v383_v4 = vsel %vm376_vm0, %v368_v1, 0.0  ;;  %v369_v7 = vld [vmem:[%s333_s8 + $0x18] sm:$0xff]  ;;  %v367_v8 = vld [vmem:[%s333_s8 + $0x8] sm:$0xff]  ;;  %v392_v9 = vsel %vm376_vm0, %v371_v6, 0.0  ;;  %s1748_s16 = scalar_lea.vmem %s2049_s6, %s1650_s19  ;;  %s1786_s20 = scalar_lea.vmem %s2050_s7, %s1650_s19 }
  0x11   : > { %v377_v5 = vsel %vm376_vm0, %v366_v2, 0.0  ;;  %390 = vadd.xlane.f32.xlu2 %v389_v3  ;;  %384 = vadd.xlane.f32.xlu1 %v383_v4  ;;  %v386_v10 = vsel %vm376_vm0, %v369_v7, 0.0  ;;  %v380_v11 = vsel %vm376_vm0, %v367_v8, 0.0  ;;  %v373_v12 = vld [vmem:[%s333_s8 + $0x38] sm:$0xff]  ;;  %v372_v13 = vld [vmem:[%s333_s8 + $0x30] sm:$0xff]  ;;  %v1324_v3 = vld [vmem:[%s2046_s3 + $0x8] sm:$0xff] }
  0x12   : > { %378 = vadd.xlane.f32.xlu0 %v377_v5  ;;  %v398_v14 = vsel %vm376_vm0, %v373_v12, 0.0  ;;  %v395_v15 = vsel %vm376_vm0, %v372_v13, 0.0  ;;  %624 = vmatpush.bf16.msra.mxu0 %v1324_v3  ;;  %s1418_s8 = smov 80  }
  0x13   : > { %v1371_v17 = vpop.eup %1370  ;;  %1325 = vmatpush.bf16.msra.mxu1 %v1324_v3  ;;  %1326 = vmatpush.bf16.msra.mxu2 %v1324_v3 }
  0x14   : > { %v402_v18 = vmul.f32 32.0, %v1371_v17  ;;  %vm406_vm1 = vweird.f32 %v1371_v17  ;;  %1327 = vmatpush.bf16.msra.mxu3 %v1324_v3 }
  0x16   : > { %v403_v19 = vsub.f32 1.0, %v402_v18 }
  0x18   : > { %v404_v20 = vmul.f32 %v1371_v17, %v403_v19 }
  0x19   : > { %393 = vadd.xlane.f32.xlu2 %v392_v9  ;;  %387 = vadd.xlane.f32.xlu1 %v386_v10 }
  0x1a   : > { %381 = vadd.xlane.f32.xlu0 %v380_v11  ;;  %v405_v21 = vadd.f32 %v1371_v17, %v404_v20 }
  0x1c   : > { %v1496_v22 = vsel %vm406_vm1, %v1371_v17, %v405_v21 }
  0x21   : > { %399 = vadd.xlane.f32.xlu1 %v398_v14 }
  0x22   : > { %396 = vadd.xlane.f32.xlu0 %v395_v15 }
  0x84   : > { %v391_v23 = vpop.xlane.xlu2 %390  ;;  %v385_v24 = vpop.xlane.xlu1 %384 }
  0x85   : > { %v410_v25 = vmul.f32 %v1496_v22, %v385_v24  ;;  %v379_v26 = vpop.xlane.xlu0 %378  ;;  %v412_v39 = vmul.f32 %v1496_v22, %v391_v23 }
  0x86   : > { %v408_v27 = vmul.f32 %v1496_v22, %v379_v26 }
  0x87   : > { %v1500_v28 = vsub.f32 %v368_v1, %v410_v25  ;;  %v1524_v46 = vsub.f32 %v370_v0, %v412_v39 }
  0x88   : > { %v1502_v29 = vsub.f32 %v366_v2, %v408_v27 }
  0x89   : > { %v426_v30 = vmul.f32 %v1500_v28, %v1500_v28  ;;  %v428_v55 = vmul.f32 %v1524_v46, %v1524_v46 }
  0x8a   : > { %v424_v31 = vmul.f32 %v1502_v29, %v1502_v29 }
  0x8b   : > { %v438_v32 = vsel %vm376_vm0, %v426_v30, 0.0  ;;  %v444_v58 = vsel %vm376_vm0, %v428_v55, 0.0 }
  0x8c   : > { %v394_v33 = vpop.xlane.xlu2 %393  ;;  %439 = vadd.xlane.f32.xlu1 %v438_v32  ;;  %v388_v34 = vpop.xlane.xlu1 %387  ;;  %v432_v35 = vsel %vm376_vm0, %v424_v31, 0.0 }
  0x8d   : > { %v413_v36 = vmul.f32 %v1496_v22, %v394_v33  ;;  %v411_v37 = vmul.f32 %v1496_v22, %v388_v34  ;;  %433 = vadd.xlane.f32.xlu2 %v432_v35  ;;  %v382_v38 = vpop.xlane.xlu0 %381 }
  0x8e   : > { %v409_v40 = vmul.f32 %v1496_v22, %v382_v38 }
  0x8f   : > { %v1514_v41 = vsub.f32 %v371_v6, %v413_v36  ;;  %v1516_v42 = vsub.f32 %v369_v7, %v411_v37  ;;  %v1323_v6 = vld [vmem:[%s2046_s3] sm:$0xff] }
  0x90   : > { %v1518_v43 = vsub.f32 %v367_v8, %v409_v40  ;;  %625 = vmatpush.bf16.msra.mxu0 %v1323_v6  ;;  %1328 = vmatpush.bf16.msra.mxu1 %v1323_v6 }
  0x91   : > { %v429_v44 = vmul.f32 %v1514_v41, %v1514_v41  ;;  %v427_v45 = vmul.f32 %v1516_v42, %v1516_v42  ;;  %1329 = vmatpush.bf16.msra.mxu2 %v1323_v6  ;;  %1330 = vmatpush.bf16.msra.mxu3 %v1323_v6 }
  0x92   : > { %v425_v47 = vmul.f32 %v1518_v43, %v1518_v43 }
  0x93   : > { %v447_v48 = vsel %vm376_vm0, %v429_v44, 0.0  ;;  %v441_v49 = vsel %vm376_vm0, %v427_v45, 0.0 }
  0x94   : > { %448 = vadd.xlane.f32.xlu1 %v447_v48  ;;  %v435_v50 = vsel %vm376_vm0, %v425_v47, 0.0  ;;  %v400_v51 = vpop.xlane.xlu1 %399 }
  0x95   : > { %442 = vadd.xlane.f32.xlu2 %v441_v49  ;;  %436 = vadd.xlane.f32.xlu0 %v435_v50  ;;  %v397_v52 = vpop.xlane.xlu0 %396  ;;  %v415_v54 = vmul.f32 %v1496_v22, %v400_v51 }
  0x96   : > { %v414_v53 = vmul.f32 %v1496_v22, %v397_v52 }
  0x97   : > { %v1537_v57 = vsub.f32 %v373_v12, %v415_v54 }
  0x98   : > { %v1535_v56 = vsub.f32 %v372_v13, %v414_v53 }
  0x99   : > { %v431_v61 = vmul.f32 %v1537_v57, %v1537_v57 }
  0x9a   : > { %v430_v59 = vmul.f32 %v1535_v56, %v1535_v56 }
  0x9b   : > { %v453_v62 = vsel %vm376_vm0, %v431_v61, 0.0 }
  0x9c   : > { %v450_v60 = vsel %vm376_vm0, %v430_v59, 0.0 }
  0x9d   : > { %445 = vadd.xlane.f32.xlu0 %v444_v58  ;;  %451 = vadd.xlane.f32.xlu2 %v450_v60 }
  0xa5   : > { %454 = vadd.xlane.f32.xlu0 %v453_v62 }
  0xff   : > { %v440_v63 = vpop.xlane.xlu1 %439 }
 0x100   : > { %v458_v0 = vmul.f32 %v440_v63, %v1496_v22  ;;  %v434_v1 = vpop.xlane.xlu2 %433 }
 0x101   : > { %v456_v2 = vmul.f32 %v434_v1, %v1496_v22 }
 0x102   : > { %v466_v4 = vadd.f32 1e-05, %v458_v0 }
 0x103   : > { %v464_v5 = vadd.f32 1e-05, %v456_v2 }
 0x104   : > { %1372 = vrsqrt.f32 %v466_v4  ;;  %vm498_vm4 = vweird.f32 %v466_v4 }
 0x105   : > { %1374 = vrsqrt.f32 %v464_v5  ;;  %vm478_vm6 = vweird.f32 %v464_v5 }
 0x107   : > { %v449_v7 = vpop.xlane.xlu1 %448 }
 0x108   : > { %v461_v8 = vmul.f32 %v449_v7, %v1496_v22  ;;  %v443_v9 = vpop.xlane.xlu2 %442  ;;  %v437_v10 = vpop.xlane.xlu0 %436 }
 0x109   : > { %v459_v11 = vmul.f32 %v443_v9, %v1496_v22  ;;  %v457_v12 = vmul.f32 %v437_v10, %v1496_v22 }
 0x10a   : > { %v1373_v13 = vpop.eup %1372  ;;  %v1557_v14 = vadd.f32 1e-05, %v461_v8 }
 0x10b   : > { %v1375_v15 = vpop.eup %1374  ;;  %v493_v16 = vmul.f32 %v1373_v13, %v466_v4  ;;  %v467_v17 = vadd.f32 1e-05, %v459_v11  ;;  %v1559_v18 = vadd.f32 1e-05, %v457_v12  ;;  %vm499_vm2 = vweird.f32 %v1373_v13 }
 0x10c   : > { %v473_v19 = vmul.f32 %v1375_v15, %v464_v5  ;;  %1376 = vrsqrt.f32 %v1557_v14  ;;  %vm479_vm3 = vweird.f32 %v1375_v15  ;;  %vm1576_vm5 = vmor %vm498_vm4, %vm499_vm2  ;;  %vm528_vm8 = vweird.f32 %v1557_v14 }
 0x10d   : > { %v494_v20 = vmul.f32 %v1373_v13, %v493_v16  ;;  %1378 = vrsqrt.f32 %v467_v17  ;;  %vm1580_vm7 = vmor %vm478_vm6, %vm479_vm3  ;;  %vm508_vm10 = vweird.f32 %v467_v17  ;;  %vm488_vm14 = vweird.f32 %v1559_v18  ;;  %v1368_v16 = vld [vmem:[%s2045_s2] ss:$0 sm:$0xff] }
 0x10e   : > { %v474_v21 = vmul.f32 %v1375_v15, %v473_v19  ;;  %1380 = vrsqrt.f32 %v1559_v18 }
 0x10f   : > { %v495_v23 = vmul.f32 0.5, %v494_v20 }
 0x110   : > { %v475_v24 = vmul.f32 0.5, %v474_v21  ;;  %v452_v25 = vpop.xlane.xlu2 %451  ;;  %v446_v26 = vpop.xlane.xlu0 %445 }
 0x111   : > { %v496_v27 = vsub.f32 1.5, %v495_v23  ;;  %v462_v30 = vmul.f32 %v452_v25, %v1496_v22  ;;  %v460_v31 = vmul.f32 %v446_v26, %v1496_v22 }
 0x112   : > { %v1565_v32 = vpop.eup %1376  ;;  %v476_v33 = vsub.f32 1.5, %v475_v24 }
 0x113   : > { %v1379_v34 = vpop.eup %1378  ;;  %v523_v35 = vmul.f32 %v1565_v32, %v1557_v14  ;;  %v1569_v36 = vadd.f32 1e-05, %v462_v30  ;;  %v1571_v39 = vadd.f32 1e-05, %v460_v31  ;;  %v497_v40 = vmul.f32 %v1373_v13, %v496_v27 }
 0x114   : > { %v1381_v37 = vpop.eup %1380  ;;  %v503_v38 = vmul.f32 %v1379_v34, %v467_v17  ;;  %v477_v44 = vmul.f32 %v1375_v15, %v476_v33  ;;  %vm509_vm9 = vweird.f32 %v1379_v34  ;;  %vm529_vm12 = vweird.f32 %v1565_v32 }
 0x115   : > { %v524_v45 = vmul.f32 %v1565_v32, %v523_v35  ;;  %v483_v47 = vmul.f32 %v1381_v37, %v1559_v18  ;;  %1382 = vrsqrt.f32 %v1569_v36  ;;  %v501_v55 = vsel %vm1576_vm5, %v1373_v13, %v497_v40  ;;  %vm510_vm13 = vmor %vm508_vm10, %vm509_vm9 }
 0x116   : > { %v504_v48 = vmul.f32 %v1379_v34, %v503_v38  ;;  %1384 = vrsqrt.f32 %v1571_v39  ;;  %v481_v58 = vsel %vm1580_vm7, %v1375_v15, %v477_v44  ;;  %vm489_vm11 = vweird.f32 %v1381_v37  ;;  %vm1605_vm1 = vmor %vm528_vm8, %vm529_vm12 }
 0x117   : > { %v525_v50 = vmul.f32 0.5, %v524_v45  ;;  %v484_v51 = vmul.f32 %v1381_v37, %v483_v47  ;;  %v554_v2 = vmul.f32 %v501_v55, %v1500_v28  ;;  %v552_v3 = vmul.f32 %v481_v58, %v1502_v29  ;;  %vm490_vm15 = vmor %vm488_vm14, %vm489_vm11 }
 0x118   : > { %v505_v53 = vmul.f32 0.5, %v504_v48  ;;  %v455_v54 = vpop.xlane.xlu0 %454  ;;  %vm538_vm2 = vweird.f32 %v1569_v36  ;;  %vm518_vm4 = vweird.f32 %v1571_v39  ;;  %vm655_vm11 = vcmask 60416  }
 0x119   : > { %v485_v59 = vmul.f32 0.5, %v484_v51  ;;  %v463_v60 = vmul.f32 %v455_v54, %v1496_v22  ;;  %v526_v61 = vsub.f32 1.5, %v525_v50  ;;  %v1597_v22 = vld [vmem:[%s2044_s1] ss:$0 sm:$0xff] }
 0x11a   : > { %v506_v62 = vsub.f32 1.5, %v505_v53  ;;  %v563_v15 = vmul.f32 %v1597_v22, %v552_v3  ;;  %v565_v14 = vmul.f32 %v1597_v22, %v554_v2 }
 0x11b   : > { %v486_v63 = vsub.f32 1.5, %v485_v59  ;;  %v471_v0 = vadd.f32 1e-05, %v463_v60  ;;  %v1383_v1 = vpop.eup %1382  ;;  %v527_v8 = vmul.f32 %v1565_v32, %v526_v61  ;;  %v1369_v61 = vld [vmem:[%s2047_s4] ss:$0 sm:$0xff] }
 0x11c   : > { %v507_v4 = vmul.f32 %v1379_v34, %v506_v62  ;;  %v533_v6 = vmul.f32 %v1383_v1, %v1569_v36  ;;  %v1385_v7 = vpop.eup %1384  ;;  %vm539_vm3 = vweird.f32 %v1383_v1  ;;  %v574_v25 = vadd.f32 %v1368_v16, %v563_v15 }
 0x11d   : > { %v487_v5 = vmul.f32 %v1381_v37, %v486_v63  ;;  %1386 = vrsqrt.f32 %v471_v0  ;;  %v513_v12 = vmul.f32 %v1385_v7, %v1571_v39  ;;  %v531_v19 = vsel %vm1605_vm1, %v1565_v32, %v527_v8  ;;  %vm1626_vm6 = vmor %vm538_vm2, %vm539_vm3 }
 0x11e   : > { %v511_v28 = vsel %vm510_vm13, %v1379_v34, %v507_v4  ;;  %v534_v11 = vmul.f32 %v1383_v1, %v533_v6  ;;  %vm519_vm5 = vweird.f32 %v1385_v7  ;;  %v576_v27 = vadd.f32 %v1368_v16, %v565_v14 }
 0x11f   : > { %v555_v9 = vmul.f32 %v511_v28, %v1516_v42  ;;  %v491_v10 = vsel %vm490_vm15, %v1381_v37, %v487_v5  ;;  %v514_v18 = vmul.f32 %v1385_v7, %v513_v12  ;;  %v557_v34 = vmul.f32 %v531_v19, %v1514_v41  ;;  %vm520_vm7 = vmor %vm518_vm4, %vm519_vm5 }
 0x120   : > { %v553_v13 = vmul.f32 %v491_v10, %v1518_v43  ;;  %v535_v17 = vmul.f32 0.5, %v534_v11  ;;  %vm548_vm8 = vweird.f32 %v471_v0 }
 0x121   : > { %v566_v42 = vmul.f32 %v1597_v22, %v555_v9  ;;  %v515_v21 = vmul.f32 0.5, %v514_v18  ;;  %v568_v39 = vmul.f32 %v1597_v22, %v557_v34 }
 0x122   : > { %v564_v43 = vmul.f32 %v1597_v22, %v553_v13  ;;  %v536_v20 = vsub.f32 1.5, %v535_v17 }
 0x123   : > { %v577_v23 = vadd.f32 %v1368_v16, %v566_v42  ;;  %v1387_v24 = vpop.eup %1386  ;;  %v516_v32 = vsub.f32 1.5, %v515_v21  ;;  %v579_v52 = vadd.f32 %v1368_v16, %v568_v39 }
 0x124   : > { %v575_v26 = vadd.f32 %v1368_v16, %v564_v43  ;;  %v537_v30 = vmul.f32 %v1383_v1, %v536_v20  ;;  %v543_v33 = vmul.f32 %v1387_v24, %v471_v0  ;;  %vm549_vm9 = vweird.f32 %v1387_v24 }
 0x125   : > { %v583_v37 = vpack.c.bf16 %v577_v23, %v576_v27  ;;  %v517_v38 = vmul.f32 %v1385_v7, %v516_v32  ;;  %vm550_vm10 = vmor %vm548_vm8, %vm549_vm9 }
 0x126   : > { %v582_v35 = vpack.c.bf16 %v575_v26, %v574_v25  ;;  %v544_v40 = vmul.f32 %v1387_v24, %v543_v33  ;;  %v541_v36 = vsel %vm1626_vm6, %v1383_v1, %v537_v30 }
 0x127   : > { %1242 = vmatmul.msk.bf16.vlgmr.msra.gmra.mxu1 %vm376_vm0, %v583_v37  ;;  %v521_v44 = vsel %vm520_vm7, %v1385_v7, %v517_v38  ;;  %v558_v48 = vmul.f32 %v541_v36, %v1535_v56 }
 0x128   : > { %1241 = vmatmul.msk.bf16.vlgmr.msra.gmra.mxu0 %vm376_vm0, %v582_v35  ;;  %v545_v45 = vmul.f32 0.5, %v544_v40  ;;  %v556_v41 = vmul.f32 %v521_v44, %v1524_v46 }
 0x129   : > { %v569_v58 = vmul.f32 %v1597_v22, %v558_v48 }
 0x12a   : > { %v546_v47 = vsub.f32 1.5, %v545_v45  ;;  %v567_v49 = vmul.f32 %v1597_v22, %v556_v41 }
 0x12b   : > { %v580_v59 = vadd.f32 %v1368_v16, %v569_v58 }
 0x12c   : > { %v547_v50 = vmul.f32 %v1387_v24, %v546_v47  ;;  %v578_v51 = vadd.f32 %v1368_v16, %v567_v49 }
 0x12e   : > { %v551_v53 = vsel %vm550_vm10, %v1387_v24, %v547_v50  ;;  %v584_v55 = vpack.c.bf16 %v579_v52, %v578_v51 }
 0x12f   : > { %v559_v54 = vmul.f32 %v551_v53, %v1537_v57 }
 0x130   : > { %1243 = vmatmul.msk.bf16.vlgmr.msra.gmra.mxu2 %vm376_vm0, %v584_v55 }
 0x131   : > { %v570_v46 = vmul.f32 %v1597_v22, %v559_v54 }
 0x133   : > { %v581_v60 = vadd.f32 %v1368_v16, %v570_v46 }
 0x135   : > { %v585_v56 = vpack.c.bf16 %v581_v60, %v580_v59 }
 0x137   : > { %1244 = vmatmul.msk.bf16.vlgmr.msra.gmra.mxu3 %vm376_vm0, %v585_v56 }
 0x1a4   : > { %v632_v62 = vpop.f32.mrf.mxu1 }
 0x1a5   : > { %v627_v57 = vpop.f32.mrf.mxu0  ;;  %v633_v0 = vadd.f32 %v1369_v61, %v632_v62 }
 0x1a6   : > { %v628_v63 = vadd.f32 %v1369_v61, %v627_v57 }
 0x1a7   : > { %v649_v2 = vpack.c.bf16 %v633_v0, %v633_v0 }
 0x1a8   : > { %v647_v1 = vpack.c.bf16 %v628_v63, %v628_v63 }
 0x1a9   : > { %676 = vrot.lane.b32.xlu0 %v649_v2, %s1413_s23  ;;  %740 = vrot.lane.b32.xlu2 %v649_v2, %s1414_s24  ;;  %658 = vst.msk [vmem:[%s1656_s22 + $0x8] sm:$0xf] %vm655_vm11, %v649_v2 }
 0x1aa   : > { %656 = vst.msk [vmem:[%s1656_s22] sm:$0xf] %vm655_vm11, %v647_v1  ;;  %672 = vrot.lane.b32.xlu1 %v647_v1, %s1413_s23 }
 0x1ac   : > { %v634_v4 = vpop.f32.mrf.mxu1 }
 0x1ad   : > { %v629_v3 = vpop.f32.mrf.mxu0  ;;  %v635_v5 = vadd.f32 %v1369_v61, %v634_v4 }
 0x1ae   : > { %v630_v22 = vadd.f32 %v1369_v61, %v629_v3 }
 0x1af   : > { %v1667_v7 = vpack.c.bf16 %v635_v5, %v635_v5 }
 0x1b0   : > { %v1665_v6 = vpack.c.bf16 %v630_v22, %v630_v22 }
 0x1b1   : > { %769 = vrot.lane.b32.xlu2 %v647_v1, %s1415_s28  ;;  %704 = vrot.lane.b32.xlu0 %v647_v1, %s1416_s29  ;;  %659 = vst.msk [vmem:[%s1656_s22 + $0xc] sm:$0xf] %vm655_vm11, %v1667_v7 }
 0x1b2   : > { %657 = vst.msk [vmem:[%s1656_s22 + $0x4] sm:$0xf] %vm655_vm11, %v1665_v6  ;;  %708 = vrot.lane.b32.xlu1 %v649_v2, %s1416_s29 }
 0x1b3   : > { %v637_v8 = vpop.f32.mrf.mxu2 }
 0x1b4   : > { %v638_v28 = vadd.f32 %v1369_v61, %v637_v8 }
 0x1b6   : > { %v1678_v29 = vpack.c.bf16 %v638_v28, %v638_v28 }
 0x1b8   : > { %660 = vst.msk [vmem:[%s1656_s22 + $0x10] sm:$0xf] %vm655_vm11, %v1678_v29 }
 0x1b9   : > { %839 = vrot.lane.b32.xlu2 %v649_v2, %s1417_s30  ;;  %773 = vrot.lane.b32.xlu0 %v649_v2, %s1415_s28 }
 0x1ba   : > { %736 = vrot.lane.b32.xlu1 %v647_v1, %s1414_s24  ;;  %v642_v9 = vpop.f32.mrf.mxu3 }
 0x1bb   : > { %v643_v10 = vadd.f32 %v1369_v61, %v642_v9  ;;  %v639_v11 = vpop.f32.mrf.mxu2 }
 0x1bc   : > { %v640_v12 = vadd.f32 %v1369_v61, %v639_v11 }
 0x1bd   : > { %v1686_v13 = vpack.c.bf16 %v643_v10, %v643_v10 }
 0x1be   : > { %v1688_v15 = vpack.c.bf16 %v640_v12, %v640_v12 }
 0x1bf   : > { %662 = vst.msk [vmem:[%s1656_s22 + $0x18] sm:$0xf] %vm655_vm11, %v1686_v13 }
 0x1c0   : > { %661 = vst.msk [vmem:[%s1656_s22 + $0x14] sm:$0xf] %vm655_vm11, %v1688_v15 }
 0x1c1   : > { %868 = vrot.lane.b32.xlu2 %v647_v1, %s1418_s8  ;;  %802 = vrot.lane.b32.xlu0 %v647_v1, %s1419_s9 }
 0x1c2   : > { %806 = vrot.lane.b32.xlu1 %v649_v2, %s1419_s9  ;;  %v644_v16 = vpop.f32.mrf.mxu3 }
 0x1c3   : > { %v645_v14 = vadd.f32 %v1369_v61, %v644_v16 }
 0x1c5   : > { %v1699_v17 = vpack.c.bf16 %v645_v14, %v645_v14 }
 0x1c7   : > { %663 = vst.msk [vmem:[%s1656_s22 + $0x1c] sm:$0xf] %vm655_vm11, %v1699_v17 }
 0x1c9   : > { %938 = vrot.lane.b32.xlu2 %v649_v2, %s1420_s10  ;;  %872 = vrot.lane.b32.xlu0 %v649_v2, %s1418_s8 }
 0x1ca   : > { %835 = vrot.lane.b32.xlu1 %v647_v1, %s1417_s30 }
 0x1d1   : > { %967 = vrot.lane.b32.xlu2 %v647_v1, %s1421_s11  ;;  %901 = vrot.lane.b32.xlu0 %v647_v1, %s1422_s12 }
 0x1d2   : > { %905 = vrot.lane.b32.xlu1 %v649_v2, %s1422_s12 }
 0x1d9   : > { %971 = vrot.lane.b32.xlu0 %v649_v2, %s1421_s11  ;;  %684 = vrot.lane.b32.xlu2 %v1686_v13, %s1413_s23 }
 0x1da   : > { %934 = vrot.lane.b32.xlu1 %v647_v1, %s1420_s10 }
 0x1e1   : > { %1000 = vrot.lane.b32.xlu0 %v647_v1, %s1423_s13  ;;  %712 = vrot.lane.b32.xlu2 %v1678_v29, %s1416_s29 }
 0x1e2   : > { %1004 = vrot.lane.b32.xlu1 %v649_v2, %s1423_s13 }
 0x1e9   : > { %716 = vrot.lane.b32.xlu0 %v1686_v13, %s1416_s29  ;;  %781 = vrot.lane.b32.xlu2 %v1686_v13, %s1415_s28 }
 0x1ea   : > { %680 = vrot.lane.b32.xlu1 %v1678_v29, %s1413_s23 }
 0x1f1   : > { %744 = vrot.lane.b32.xlu0 %v1678_v29, %s1414_s24  ;;  %810 = vrot.lane.b32.xlu2 %v1678_v29, %s1419_s9 }
 0x1f2   : > { %748 = vrot.lane.b32.xlu1 %v1686_v13, %s1414_s24 }
 0x1f9   : > { %814 = vrot.lane.b32.xlu0 %v1686_v13, %s1419_s9  ;;  %880 = vrot.lane.b32.xlu2 %v1686_v13, %s1418_s8 }
 0x1fa   : > { %777 = vrot.lane.b32.xlu1 %v1678_v29, %s1415_s28 }
 0x201   : > { %843 = vrot.lane.b32.xlu0 %v1678_v29, %s1417_s30  ;;  %909 = vrot.lane.b32.xlu2 %v1678_v29, %s1422_s12 }
 0x202   : > { %847 = vrot.lane.b32.xlu1 %v1686_v13, %s1417_s30 }
 0x203   : > { %v741_v18 = vpop.permute.xlu2 %740 }
 0x204   : > { %1247 = vst.msk [vmem:[%s1656_s22 + $0x28] sm:$0xf] %vm655_vm11, %v741_v18 }
 0x209   : > { %913 = vrot.lane.b32.xlu0 %v1686_v13, %s1422_s12  ;;  %979 = vrot.lane.b32.xlu2 %v1686_v13, %s1421_s11 }
 0x20a   : > { %876 = vrot.lane.b32.xlu1 %v1678_v29, %s1418_s8 }
 0x20b   : > { %v770_v42 = vpop.permute.xlu2 %769 }
 0x20c   : > { %1253 = vst.msk [vmem:[%s1748_s16 + $0x20] sm:$0xf] %vm655_vm11, %v770_v42 }
 0x211   : > { %942 = vrot.lane.b32.xlu0 %v1678_v29, %s1420_s10  ;;  %1008 = vrot.lane.b32.xlu2 %v1678_v29, %s1423_s13 }
 0x212   : > { %946 = vrot.lane.b32.xlu1 %v1686_v13, %s1420_s10 }
 0x213   : > { %v840_v19 = vpop.permute.xlu2 %839 }
 0x214   : > { %1271 = vst.msk [vmem:[%s1656_s22 + $0x48] sm:$0xf] %vm655_vm11, %v840_v19 }
 0x219   : > { %710 = vrot.lane.b32.xlu0 %v1667_v7, %s1416_s29  ;;  %674 = vrot.lane.b32.xlu2 %v1665_v6, %s1413_s23 }
 0x21a   : > { %975 = vrot.lane.b32.xlu1 %v1678_v29, %s1421_s11 }
 0x21b   : > { %v869_v43 = vpop.permute.xlu2 %868  ;;  %v677_v20 = vpop.permute.xlu0 %676 }
 0x21c   : > { %1277 = vst.msk [vmem:[%s1748_s16 + $0x40] sm:$0xf] %vm655_vm11, %v869_v43  ;;  %v673_v21 = vpop.permute.xlu1 %672 }
 0x21d   : > { %696 = vst.msk [vmem:[%s1748_s16] sm:$0xf] %vm655_vm11, %v673_v21 }
 0x21e   : > { %698 = vst.msk [vmem:[%s1748_s16 + $0x8] sm:$0xf] %vm655_vm11, %v677_v20 }
 0x221   : > { %738 = vrot.lane.b32.xlu0 %v1665_v6, %s1414_s24  ;;  %678 = vrot.lane.b32.xlu2 %v1667_v7, %s1413_s23 }
 0x222   : > { %742 = vrot.lane.b32.xlu1 %v1667_v7, %s1414_s24 }
 0x223   : > { %v939_v23 = vpop.permute.xlu2 %938  ;;  %v705_v24 = vpop.permute.xlu0 %704 }
 0x224   : > { %1295 = vst.msk [vmem:[%s1656_s22 + $0x68] sm:$0xf] %vm655_vm11, %v939_v23  ;;  %v709_v25 = vpop.permute.xlu1 %708 }
 0x225   : > { %730 = vst.msk [vmem:[%s1786_s20 + $0x8] sm:$0xf] %vm655_vm11, %v709_v25 }
 0x226   : > { %728 = vst.msk [vmem:[%s1786_s20] sm:$0xf] %vm655_vm11, %v705_v24 }
 0x229   : > { %808 = vrot.lane.b32.xlu0 %v1667_v7, %s1419_s9  ;;  %706 = vrot.lane.b32.xlu2 %v1665_v6, %s1416_s29 }
 0x22a   : > { %771 = vrot.lane.b32.xlu1 %v1665_v6, %s1415_s28 }
 0x22b   : > { %v968_v26 = vpop.permute.xlu2 %967  ;;  %v774_v27 = vpop.permute.xlu0 %773 }
 0x22c   : > { %1301 = vst.msk [vmem:[%s1748_s16 + $0x60] sm:$0xf] %vm655_vm11, %v968_v26  ;;  %v737_v30 = vpop.permute.xlu1 %736 }
 0x22d   : > { %1245 = vst.msk [vmem:[%s1656_s22 + $0x20] sm:$0xf] %vm655_vm11, %v737_v30 }
 0x22e   : > { %1255 = vst.msk [vmem:[%s1748_s16 + $0x28] sm:$0xf] %vm655_vm11, %v774_v27 }
 0x231   : > { %837 = vrot.lane.b32.xlu0 %v1665_v6, %s1417_s30  ;;  %775 = vrot.lane.b32.xlu2 %v1667_v7, %s1415_s28 }
 0x232   : > { %841 = vrot.lane.b32.xlu1 %v1667_v7, %s1417_s30 }
 0x233   : > { %v685_v31 = vpop.permute.xlu2 %684  ;;  %v803_v32 = vpop.permute.xlu0 %802 }
 0x234   : > { %v807_v33 = vpop.permute.xlu1 %806  ;;  %702 = vst.msk [vmem:[%s1748_s16 + $0x18] sm:$0xf] %vm655_vm11, %v685_v31 }
 0x235   : > { %1263 = vst.msk [vmem:[%s1786_s20 + $0x28] sm:$0xf] %vm655_vm11, %v807_v33 }
 0x236   : > { %1261 = vst.msk [vmem:[%s1786_s20 + $0x20] sm:$0xf] %vm655_vm11, %v803_v32 }
 0x239   : > { %907 = vrot.lane.b32.xlu0 %v1667_v7, %s1422_s12  ;;  %804 = vrot.lane.b32.xlu2 %v1665_v6, %s1419_s9 }
 0x23a   : > { %870 = vrot.lane.b32.xlu1 %v1665_v6, %s1418_s8 }
 0x23b   : > { %v713_v34 = vpop.permute.xlu2 %712  ;;  %v873_v35 = vpop.permute.xlu0 %872 }
 0x23c   : > { %v836_v37 = vpop.permute.xlu1 %835  ;;  %732 = vst.msk [vmem:[%s1786_s20 + $0x10] sm:$0xf] %vm655_vm11, %v713_v34 }
 0x23d   : > { %1269 = vst.msk [vmem:[%s1656_s22 + $0x40] sm:$0xf] %vm655_vm11, %v836_v37 }
 0x23e   : > { %1279 = vst.msk [vmem:[%s1748_s16 + $0x48] sm:$0xf] %vm655_vm11, %v873_v35 }
 0x241   : > { %936 = vrot.lane.b32.xlu0 %v1665_v6, %s1420_s10  ;;  %874 = vrot.lane.b32.xlu2 %v1667_v7, %s1418_s8 }
 0x242   : > { %940 = vrot.lane.b32.xlu1 %v1667_v7, %s1420_s10 }
 0x243   : > { %v782_v38 = vpop.permute.xlu2 %781  ;;  %v902_v40 = vpop.permute.xlu0 %901 }
 0x244   : > { %v906_v36 = vpop.permute.xlu1 %905  ;;  %1259 = vst.msk [vmem:[%s1748_s16 + $0x38] sm:$0xf] %vm655_vm11, %v782_v38 }
 0x245   : > { %1287 = vst.msk [vmem:[%s1786_s20 + $0x48] sm:$0xf] %vm655_vm11, %v906_v36 }
 0x246   : > { %1285 = vst.msk [vmem:[%s1786_s20 + $0x40] sm:$0xf] %vm655_vm11, %v902_v40 }
 0x249   : > { %1006 = vrot.lane.b32.xlu0 %v1667_v7, %s1423_s13  ;;  %903 = vrot.lane.b32.xlu2 %v1665_v6, %s1422_s12 }
 0x24a   : > { %969 = vrot.lane.b32.xlu1 %v1665_v6, %s1421_s11 }
 0x24b   : > { %v811_v44 = vpop.permute.xlu2 %810  ;;  %v972_v45 = vpop.permute.xlu0 %971 }
 0x24c   : > { %v935_v41 = vpop.permute.xlu1 %934  ;;  %1265 = vst.msk [vmem:[%s1786_s20 + $0x30] sm:$0xf] %vm655_vm11, %v811_v44 }
 0x24d   : > { %1293 = vst.msk [vmem:[%s1656_s22 + $0x60] sm:$0xf] %vm655_vm11, %v935_v41 }
 0x24e   : > { %1303 = vst.msk [vmem:[%s1748_s16 + $0x68] sm:$0xf] %vm655_vm11, %v972_v45 }
 0x251   : > { %682 = vrot.lane.b32.xlu0 %v1688_v15, %s1413_s23  ;;  %973 = vrot.lane.b32.xlu2 %v1667_v7, %s1421_s11 }
 0x252   : > { %686 = vrot.lane.b32.xlu1 %v1699_v17, %s1413_s23 }
 0x253   : > { %v881_v39 = vpop.permute.xlu2 %880  ;;  %v1001_v47 = vpop.permute.xlu0 %1000 }
 0x254   : > { %v1005_v48 = vpop.permute.xlu1 %1004  ;;  %1283 = vst.msk [vmem:[%s1748_s16 + $0x58] sm:$0xf] %vm655_vm11, %v881_v39 }
 0x255   : > { %1311 = vst.msk [vmem:[%s1786_s20 + $0x68] sm:$0xf] %vm655_vm11, %v1005_v48 }
 0x256   : > { %1309 = vst.msk [vmem:[%s1786_s20 + $0x60] sm:$0xf] %vm655_vm11, %v1001_v47 }
 0x259   : > { %750 = vrot.lane.b32.xlu0 %v1699_v17, %s1414_s24  ;;  %1002 = vrot.lane.b32.xlu2 %v1665_v6, %s1423_s13 }
 0x25a   : > { %714 = vrot.lane.b32.xlu1 %v1688_v15, %s1416_s29 }
 0x25b   : > { %v910_v49 = vpop.permute.xlu2 %909  ;;  %v717_v50 = vpop.permute.xlu0 %716 }
 0x25c   : > { %v681_v51 = vpop.permute.xlu1 %680  ;;  %1289 = vst.msk [vmem:[%s1786_s20 + $0x50] sm:$0xf] %vm655_vm11, %v910_v49 }
 0x25d   : > { %700 = vst.msk [vmem:[%s1748_s16 + $0x10] sm:$0xf] %vm655_vm11, %v681_v51 }
 0x25e   : > { %734 = vst.msk [vmem:[%s1786_s20 + $0x18] sm:$0xf] %vm655_vm11, %v717_v50 }
 0x261   : > { %779 = vrot.lane.b32.xlu0 %v1688_v15, %s1415_s28  ;;  %718 = vrot.lane.b32.xlu2 %v1699_v17, %s1416_s29 }
 0x262   : > { %783 = vrot.lane.b32.xlu1 %v1699_v17, %s1415_s28 }
 0x263   : > { %v980_v52 = vpop.permute.xlu2 %979  ;;  %v745_v53 = vpop.permute.xlu0 %744 }
 0x264   : > { %v749_v54 = vpop.permute.xlu1 %748  ;;  %1307 = vst.msk [vmem:[%s1748_s16 + $0x78] sm:$0xf] %vm655_vm11, %v980_v52 }
 0x265   : > { %1251 = vst.msk [vmem:[%s1656_s22 + $0x38] sm:$0xf] %vm655_vm11, %v749_v54 }
 0x266   : > { %1249 = vst.msk [vmem:[%s1656_s22 + $0x30] sm:$0xf] %vm655_vm11, %v745_v53 }
 0x269   : > { %849 = vrot.lane.b32.xlu0 %v1699_v17, %s1417_s30  ;;  %746 = vrot.lane.b32.xlu2 %v1688_v15, %s1414_s24 }
 0x26a   : > { %812 = vrot.lane.b32.xlu1 %v1688_v15, %s1419_s9 }
 0x26b   : > { %v1009_v55 = vpop.permute.xlu2 %1008  ;;  %v815_v58 = vpop.permute.xlu0 %814 }
 0x26c   : > { %v778_v46 = vpop.permute.xlu1 %777  ;;  %1313 = vst.msk [vmem:[%s1786_s20 + $0x70] sm:$0xf] %vm655_vm11, %v1009_v55 }
 0x26d   : > { %1257 = vst.msk [vmem:[%s1748_s16 + $0x30] sm:$0xf] %vm655_vm11, %v778_v46 }
 0x26e   : > { %1267 = vst.msk [vmem:[%s1786_s20 + $0x38] sm:$0xf] %vm655_vm11, %v815_v58 }
 0x271   : > { %878 = vrot.lane.b32.xlu0 %v1688_v15, %s1418_s8  ;;  %816 = vrot.lane.b32.xlu2 %v1699_v17, %s1419_s9 }
 0x272   : > { %882 = vrot.lane.b32.xlu1 %v1699_v17, %s1418_s8 }
 0x273   : > { %v675_v59 = vpop.permute.xlu2 %674  ;;  %v844_v60 = vpop.permute.xlu0 %843 }
 0x274   : > { %v848_v56 = vpop.permute.xlu1 %847  ;;  %697 = vst.msk [vmem:[%s1748_s16 + $0x4] sm:$0xf] %vm655_vm11, %v675_v59 }
 0x275   : > { %1275 = vst.msk [vmem:[%s1656_s22 + $0x58] sm:$0xf] %vm655_vm11, %v848_v56 }
 0x276   : > { %1273 = vst.msk [vmem:[%s1656_s22 + $0x50] sm:$0xf] %vm655_vm11, %v844_v60 }
 0x279   : > { %948 = vrot.lane.b32.xlu0 %v1699_v17, %s1420_s10  ;;  %845 = vrot.lane.b32.xlu2 %v1688_v15, %s1417_s30 }
 0x27a   : > { %911 = vrot.lane.b32.xlu1 %v1688_v15, %s1422_s12 }
 0x27b   : > { %v679_v61 = vpop.permute.xlu2 %678  ;;  %v914_v57 = vpop.permute.xlu0 %913 }
 0x27c   : > { %v877_v62 = vpop.permute.xlu1 %876  ;;  %699 = vst.msk [vmem:[%s1748_s16 + $0xc] sm:$0xf] %vm655_vm11, %v679_v61 }
 0x27d   : > { %1281 = vst.msk [vmem:[%s1748_s16 + $0x50] sm:$0xf] %vm655_vm11, %v877_v62 }
 0x27e   : > { %1291 = vst.msk [vmem:[%s1786_s20 + $0x58] sm:$0xf] %vm655_vm11, %v914_v57 }
 0x281   : > { %977 = vrot.lane.b32.xlu0 %v1688_v15, %s1421_s11  ;;  %915 = vrot.lane.b32.xlu2 %v1699_v17, %s1422_s12 }
 0x282   : > { %981 = vrot.lane.b32.xlu1 %v1699_v17, %s1421_s11 }
 0x283   : > { %v707_v63 = vpop.permute.xlu2 %706  ;;  %v943_v0 = vpop.permute.xlu0 %942 }
 0x284   : > { %v947_v1 = vpop.permute.xlu1 %946  ;;  %729 = vst.msk [vmem:[%s1786_s20 + $0x4] sm:$0xf] %vm655_vm11, %v707_v63 }
 0x285   : > { %1299 = vst.msk [vmem:[%s1656_s22 + $0x78] sm:$0xf] %vm655_vm11, %v947_v1 }
 0x286   : > { %1297 = vst.msk [vmem:[%s1656_s22 + $0x70] sm:$0xf] %vm655_vm11, %v943_v0 }
 0x289   : > { %1012 = vrot.lane.b32.xlu0 %v1686_v13, %s1423_s13  ;;  %944 = vrot.lane.b32.xlu2 %v1688_v15, %s1420_s10 }
 0x28a   : > { %1010 = vrot.lane.b32.xlu1 %v1688_v15, %s1423_s13 }
 0x28b   : > { %v776_v2 = vpop.permute.xlu2 %775  ;;  %v711_v3 = vpop.permute.xlu0 %710 }
 0x28c   : > { %v976_v4 = vpop.permute.xlu1 %975  ;;  %1256 = vst.msk [vmem:[%s1748_s16 + $0x2c] sm:$0xf] %vm655_vm11, %v776_v2 }
 0x28d   : > { %1305 = vst.msk [vmem:[%s1748_s16 + $0x70] sm:$0xf] %vm655_vm11, %v976_v4 }
 0x28e   : > { %731 = vst.msk [vmem:[%s1786_s20 + $0xc] sm:$0xf] %vm655_vm11, %v711_v3 }
 0x291   : > { %1014 = vrot.lane.b32.xlu2 %v1699_v17, %s1423_s13 }
 0x293   : > { %v805_v22 = vpop.permute.xlu2 %804  ;;  %v739_v5 = vpop.permute.xlu0 %738 }
 0x294   : > { %v743_v6 = vpop.permute.xlu1 %742  ;;  %1262 = vst.msk [vmem:[%s1786_s20 + $0x24] sm:$0xf] %vm655_vm11, %v805_v22 }
 0x295   : > { %1248 = vst.msk [vmem:[%s1656_s22 + $0x2c] sm:$0xf] %vm655_vm11, %v743_v6 }
 0x296   : > { %1246 = vst.msk [vmem:[%s1656_s22 + $0x24] sm:$0xf] %vm655_vm11, %v739_v5 }
 0x29b   : > { %v875_v7 = vpop.permute.xlu2 %874  ;;  %v809_v8 = vpop.permute.xlu0 %808 }
 0x29c   : > { %v772_v28 = vpop.permute.xlu1 %771  ;;  %1280 = vst.msk [vmem:[%s1748_s16 + $0x4c] sm:$0xf] %vm655_vm11, %v875_v7 }
 0x29d   : > { %1254 = vst.msk [vmem:[%s1748_s16 + $0x24] sm:$0xf] %vm655_vm11, %v772_v28 }
 0x29e   : > { %1264 = vst.msk [vmem:[%s1786_s20 + $0x2c] sm:$0xf] %vm655_vm11, %v809_v8 }
 0x2a3   : > { %v904_v29 = vpop.permute.xlu2 %903  ;;  %v838_v9 = vpop.permute.xlu0 %837 }
 0x2a4   : > { %v842_v10 = vpop.permute.xlu1 %841  ;;  %1286 = vst.msk [vmem:[%s1786_s20 + $0x44] sm:$0xf] %vm655_vm11, %v904_v29 }
 0x2a5   : > { %1272 = vst.msk [vmem:[%s1656_s22 + $0x4c] sm:$0xf] %vm655_vm11, %v842_v10 }
 0x2a6   : > { %1270 = vst.msk [vmem:[%s1656_s22 + $0x44] sm:$0xf] %vm655_vm11, %v838_v9 }
 0x2ab   : > { %v974_v11 = vpop.permute.xlu2 %973  ;;  %v908_v12 = vpop.permute.xlu0 %907 }
 0x2ac   : > { %v871_v13 = vpop.permute.xlu1 %870  ;;  %1304 = vst.msk [vmem:[%s1748_s16 + $0x6c] sm:$0xf] %vm655_vm11, %v974_v11 }
 0x2ad   : > { %1278 = vst.msk [vmem:[%s1748_s16 + $0x44] sm:$0xf] %vm655_vm11, %v871_v13 }
 0x2ae   : > { %1288 = vst.msk [vmem:[%s1786_s20 + $0x4c] sm:$0xf] %vm655_vm11, %v908_v12 }
 0x2b3   : > { %v1003_v15 = vpop.permute.xlu2 %1002  ;;  %v937_v16 = vpop.permute.xlu0 %936 }
 0x2b4   : > { %v941_v14 = vpop.permute.xlu1 %940  ;;  %1310 = vst.msk [vmem:[%s1786_s20 + $0x64] sm:$0xf] %vm655_vm11, %v1003_v15 }
 0x2b5   : > { %1296 = vst.msk [vmem:[%s1656_s22 + $0x6c] sm:$0xf] %vm655_vm11, %v941_v14 }
 0x2b6   : > { %1294 = vst.msk [vmem:[%s1656_s22 + $0x64] sm:$0xf] %vm655_vm11, %v937_v16 }
 0x2bb   : > { %v719_v17 = vpop.permute.xlu2 %718  ;;  %v1007_v18 = vpop.permute.xlu0 %1006 }
 0x2bc   : > { %v970_v42 = vpop.permute.xlu1 %969  ;;  %735 = vst.msk [vmem:[%s1786_s20 + $0x1c] sm:$0xf] %vm655_vm11, %v719_v17 }
 0x2bd   : > { %1302 = vst.msk [vmem:[%s1748_s16 + $0x64] sm:$0xf] %vm655_vm11, %v970_v42 }
 0x2be   : > { %1312 = vst.msk [vmem:[%s1786_s20 + $0x6c] sm:$0xf] %vm655_vm11, %v1007_v18 }
 0x2c3   : > { %v747_v19 = vpop.permute.xlu2 %746  ;;  %v683_v43 = vpop.permute.xlu0 %682 }
 0x2c4   : > { %v687_v20 = vpop.permute.xlu1 %686  ;;  %1250 = vst.msk [vmem:[%s1656_s22 + $0x34] sm:$0xf] %vm655_vm11, %v747_v19 }
 0x2c5   : > { %703 = vst.msk [vmem:[%s1748_s16 + $0x1c] sm:$0xf] %vm655_vm11, %v687_v20 }
 0x2c6   : > { %701 = vst.msk [vmem:[%s1748_s16 + $0x14] sm:$0xf] %vm655_vm11, %v683_v43 }
 0x2cb   : > { %v817_v21 = vpop.permute.xlu2 %816  ;;  %v751_v23 = vpop.permute.xlu0 %750 }
 0x2cc   : > { %v715_v24 = vpop.permute.xlu1 %714  ;;  %1268 = vst.msk [vmem:[%s1786_s20 + $0x3c] sm:$0xf] %vm655_vm11, %v817_v21 }
 0x2cd   : > { %733 = vst.msk [vmem:[%s1786_s20 + $0x14] sm:$0xf] %vm655_vm11, %v715_v24 }
 0x2ce   : > { %1252 = vst.msk [vmem:[%s1656_s22 + $0x3c] sm:$0xf] %vm655_vm11, %v751_v23 }
 0x2d3   : > { %v846_v25 = vpop.permute.xlu2 %845  ;;  %v780_v26 = vpop.permute.xlu0 %779 }
 0x2d4   : > { %v784_v27 = vpop.permute.xlu1 %783  ;;  %1274 = vst.msk [vmem:[%s1656_s22 + $0x54] sm:$0xf] %vm655_vm11, %v846_v25 }
 0x2d5   : > { %1260 = vst.msk [vmem:[%s1748_s16 + $0x3c] sm:$0xf] %vm655_vm11, %v784_v27 }
 0x2d6   : > { %1258 = vst.msk [vmem:[%s1748_s16 + $0x34] sm:$0xf] %vm655_vm11, %v780_v26 }
 0x2db   : > { %v916_v30 = vpop.permute.xlu2 %915  ;;  %v850_v31 = vpop.permute.xlu0 %849 }
 0x2dc   : > { %v813_v32 = vpop.permute.xlu1 %812  ;;  %1292 = vst.msk [vmem:[%s1786_s20 + $0x5c] sm:$0xf] %vm655_vm11, %v916_v30 }
 0x2dd   : > { %1266 = vst.msk [vmem:[%s1786_s20 + $0x34] sm:$0xf] %vm655_vm11, %v813_v32 }
 0x2de   : > { %1276 = vst.msk [vmem:[%s1656_s22 + $0x5c] sm:$0xf] %vm655_vm11, %v850_v31 }
 0x2e3   : > { %v945_v33 = vpop.permute.xlu2 %944  ;;  %v879_v34 = vpop.permute.xlu0 %878 }
 0x2e4   : > { %v883_v35 = vpop.permute.xlu1 %882  ;;  %1298 = vst.msk [vmem:[%s1656_s22 + $0x74] sm:$0xf] %vm655_vm11, %v945_v33 }
 0x2e5   : > { %1284 = vst.msk [vmem:[%s1748_s16 + $0x5c] sm:$0xf] %vm655_vm11, %v883_v35 }
 0x2e6   : > { %1282 = vst.msk [vmem:[%s1748_s16 + $0x54] sm:$0xf] %vm655_vm11, %v879_v34 }
 0x2eb   : > { %v1015_v37 = vpop.permute.xlu2 %1014  ;;  %v949_v38 = vpop.permute.xlu0 %948 }
 0x2ec   : > { %v912_v40 = vpop.permute.xlu1 %911  ;;  %1316 = vst.msk [vmem:[%s1786_s20 + $0x7c] sm:$0xf] %vm655_vm11, %v1015_v37 }
 0x2ed   : > { %1290 = vst.msk [vmem:[%s1786_s20 + $0x54] sm:$0xf] %vm655_vm11, %v912_v40 }
 0x2ee   : > { %1300 = vst.msk [vmem:[%s1656_s22 + $0x7c] sm:$0xf] %vm655_vm11, %v949_v38 }
 0x2f3   : > { %v978_v36 = vpop.permute.xlu0 %977 }
 0x2f4   : > { %v982_v44 = vpop.permute.xlu1 %981  ;;  %1306 = vst.msk [vmem:[%s1748_s16 + $0x74] sm:$0xf] %vm655_vm11, %v978_v36 }
 0x2f5   : > { %1308 = vst.msk [vmem:[%s1748_s16 + $0x7c] sm:$0xf] %vm655_vm11, %v982_v44 }
 0x2fb   : > { %v1013_v45 = vpop.permute.xlu0 %1012 }
 0x2fc   : > { %v1011_v41 = vpop.permute.xlu1 %1010  ;;  %1315 = vst.msk [vmem:[%s1786_s20 + $0x78] sm:$0xf] %vm655_vm11, %v1013_v45 }
 0x2fd   : > { %1314 = vst.msk [vmem:[%s1786_s20 + $0x74] sm:$0xf] %vm655_vm11, %v1011_v41 }
 0x2fe PF: > { %s18_s26 = sadd.s32 1, %s1410_s26   ;;  %s2059_s24 = smov %s1406_s25 }
 0x2ff   : > { %p15_p5 = scmp.ge.s32.totalorder %s18_s26, 4   ;;  %s2060_s25 = smov %s2062_s27 }
 0x301   :  { %17 = sbr.rel (!%p15_p5) target bundleno = 2 (0x2), region = 103 }

</bundles_post_ra>
